<compile_context>
chip_gen: v7x
topology: tpu7x:2x2x1
jax: 0.10.0
libtpu: 0.0.40
codegen_flags: <defaults>
</compile_context>

<pallas_src>
import jax
import jax.numpy as jnp
from jax.experimental import pallas as pl
from jax.experimental.pallas import tpu as pltpu


def point_transformer_kernel(feat_ref, featk_ref, rel_ref,
                             w_phi_t_ref, w_pa_t_ref,
                             th1_t_ref, th2_t_ref, g1_t_ref, g2_t_ref,
                             out_ref):
    # feat_ref  : (1, Cin, TN)     bf16   query features (channels-first)
    # featk_ref : (1, K, Cin, TN)  bf16   gathered neighbor features
    # rel_ref   : (1, K, Ccp, TN)  bf16   coords[n] - coords[knn(n, j)] (padded)
    # weights (out-major, bf16): w_phi_t (Cout, Cin), w_pa_t (2*Cout, Cin),
    #   th1_t (Cout, Ccp), th2_t/g1_t/g2_t (Cout, Cout)
    # out_ref   : (1, Cout, TN)    f32    == PyTorch output layout
    f32 = jnp.float32
    bf16 = jnp.bfloat16
    K = featk_ref.shape[1]
    Cout = w_phi_t_ref.shape[0]

    # weights are VMEM-resident across grid steps; load once per step
    w_phi = w_phi_t_ref[...]
    w_pa = w_pa_t_ref[...]
    th1 = th1_t_ref[...]
    th2 = th2_t_ref[...]
    g1 = g1_t_ref[...]
    g2 = g2_t_ref[...]

    feat = feat_ref[0]                                                   # (Cin, TN)
    phi = jnp.dot(w_phi, feat, preferred_element_type=f32)               # (Cout, TN)

    gammas = []
    ads = []
    for kk in range(K):                    # static unroll over neighbors
        xk = featk_ref[0, kk]                                            # (Cin, TN)
        rk = rel_ref[0, kk]                                              # (Ccp, TN)

        # fused psi/alpha projection (one MXU pass over gathered features)
        pa = jnp.dot(w_pa, xk, preferred_element_type=f32)               # (2*Cout, TN)
        psi_k = pa[:Cout]
        alpha_k = pa[Cout:]

        # PositionEncoding delta: 1x1 conv -> ReLU -> 1x1 conv (no bias)
        h = jnp.maximum(jnp.dot(th1, rk, preferred_element_type=f32), 0.0)
        delta_k = jnp.dot(th2, h.astype(bf16), preferred_element_type=f32)

        # mlp_gamma on (phi - psi + delta)
        g_in = phi - psi_k + delta_k
        gh = jnp.maximum(jnp.dot(g1, g_in.astype(bf16),
                                 preferred_element_type=f32), 0.0)
        gamma_k = jnp.dot(g2, gh.astype(bf16), preferred_element_type=f32)

        gammas.append(gamma_k)
        ads.append(alpha_k + delta_k)       # alpha dies here; only ad kept live

    # softmax over the K neighbor axis == elementwise combine of K planes (VPU only)
    m = gammas[0]
    for g in gammas[1:]:
        m = jnp.maximum(m, g)
    es = [jnp.exp(g - m) for g in gammas]
    denom = es[0]
    for e in es[1:]:
        denom = denom + e
    inv = pl.reciprocal(denom, approx=True)                              # EUP slot

    acc = es[0] * ads[0]
    for e, ad in zip(es[1:], ads[1:]):
        acc = acc + e * ad
    out_ref[0] = (acc * inv).astype(out_ref.dtype)


def _pick_tile(n, target):
    """Largest N tile <= target that divides n and is a multiple of 128 (or n)."""
    if n <= target:
        return n
    for t in range(target - target % 128, 0, -128):
        if n % t == 0:
            return t
    return n


def point_transformer_layer(features, coords, params, k, block_n=256):
    """features: (B, C_in, N), coords: (B, 3, N)  ->  (B, C_out, N)"""
    B, Cin, N = features.shape
    Cc = coords.shape[1]
    Cout = params["w_phi"].shape[1]
    Ccp = 8
    bf16 = jnp.bfloat16

    # ---- glue: kNN + data-dependent gathers (plain JAX) ----
    # TODO(synk): top-k neighbor selection / irregular gather stay in JAX;
    # the dense per-neighbor math runs in the Pallas kernel.
    cT = jnp.transpose(coords, (0, 2, 1))                                 # (B, N, Cc)
    d = jnp.sum((cT[:, :, None, :] - cT[:, None, :, :]) ** 2, axis=-1)    # (B, N, N)
    _, knn_idx = jax.lax.top_k(-d, k)                                     # (B, N, k)

    def gather_cf(x_cn, idx_nk):            # (C, N), (N, K) -> (K, C, N)
        return jnp.transpose(x_cn[:, idx_nk], (2, 0, 1))

    featk = jax.vmap(gather_cf)(features, knn_idx)                        # (B, K, Cin, N)
    coordsk = jax.vmap(gather_cf)(coords, knn_idx)                        # (B, K, Cc, N)
    rel = coords[:, None, :, :] - coordsk                                 # (B, K, Cc, N)
    # pad the tiny coord-channel dim (3 -> 8); zero rows in w_theta1 keep math exact
    rel = jnp.pad(rel, ((0, 0), (0, 0), (0, Ccp - Cc), (0, 0)))

    # bf16 MXU operands (halves DMA bytes / VMEM); accumulation stays f32 in-kernel
    feat_bf = features.astype(bf16)
    featk_bf = featk.astype(bf16)
    rel_bf = rel.astype(bf16)

    # pre-transposed (out-major) weights; psi/alpha fused into one slab
    w_phi_t = params["w_phi"].T.astype(bf16)                              # (Cout, Cin)
    w_pa_t = jnp.concatenate([params["w_psi"].T,
                              params["w_alpha"].T], axis=0).astype(bf16)  # (2Cout, Cin)
    th1_t = jnp.pad(params["w_theta1"], ((0, Ccp - Cc), (0, 0))).T.astype(bf16)
    th2_t = params["w_theta2"].T.astype(bf16)
    g1_t = params["w_gamma1"].T.astype(bf16)
    g2_t = params["w_gamma2"].T.astype(bf16)

    tn = _pick_tile(N, block_n)
    grid = (B, N // tn)

    def wspec(shape):
        return pl.BlockSpec(shape, lambda b, n: (0,) * len(shape))

    out = pl.pallas_call(
        point_transformer_kernel,
        out_shape=jax.ShapeDtypeStruct((B, Cout, N), jnp.float32),
        grid=grid,
        in_specs=[
            pl.BlockSpec((1, Cin, tn), lambda b, n: (b, 0, n)),
            pl.BlockSpec((1, k, Cin, tn), lambda b, n: (b, 0, 0, n)),
            pl.BlockSpec((1, k, Ccp, tn), lambda b, n: (b, 0, 0, n)),
            wspec(w_phi_t.shape),
            wspec(w_pa_t.shape),
            wspec(th1_t.shape),
            wspec(th2_t.shape),
            wspec(g1_t.shape),
            wspec(g2_t.shape),
        ],
        out_specs=pl.BlockSpec((1, Cout, tn), lambda b, n: (b, 0, n)),
        compiler_params=pltpu.CompilerParams(
            dimension_semantics=("parallel", "parallel")),
    )(feat_bf, featk_bf, rel_bf,
      w_phi_t, w_pa_t, th1_t, th2_t, g1_t, g2_t)

    return out   # already channels-first (B, C_out, N); no wrapper transpose


def reference_forward(features, coords, params, k):
    """Pure-JAX f32 reference mirroring the PyTorch module."""
    cT = jnp.transpose(coords, (0, 2, 1))
    d = jnp.sum((cT[:, :, None, :] - cT[:, None, :, :]) ** 2, axis=-1)
    _, idx = jax.lax.top_k(-d, k)
    fT = jnp.transpose(features, (0, 2, 1))
    gather = jax.vmap(lambda a, i: a[i])
    fk = gather(fT, idx)
    ck = gather(cT, idx)
    rel = cT[:, :, None, :] - ck
    relu = lambda x: jnp.maximum(x, 0.0)
    delta = relu(rel @ params["w_theta1"]) @ params["w_theta2"]
    phi = fT @ params["w_phi"]
    psi = fk @ params["w_psi"]
    alpha = fk @ params["w_alpha"]
    g_in = phi[:, :, None, :] - psi + delta
    gamma = relu(g_in @ params["w_gamma1"]) @ params["w_gamma2"]
    rho = jax.nn.softmax(gamma, axis=2)
    out = jnp.sum(rho * (alpha + delta), axis=2)
    return jnp.transpose(out, (0, 2, 1))


if __name__ == "__main__":
    B, Cin, Cout, N, K, Cc = 2, 8, 16, 16, 8, 3

    key = jax.random.PRNGKey(0)
    keys = jax.random.split(key, 9)
    features = jax.random.normal(keys[0], (B, Cin, N), dtype=jnp.float32)
    coords = jax.random.normal(keys[1], (B, Cc, N), dtype=jnp.float32)

    s = 0.2  # deterministic synthetic weights (no checkpoint)
    params = {
        "w_phi":    jax.random.normal(keys[2], (Cin, Cout), jnp.float32) * s,
        "w_psi":    jax.random.normal(keys[3], (Cin, Cout), jnp.float32) * s,
        "w_alpha":  jax.random.normal(keys[4], (Cin, Cout), jnp.float32) * s,
        "w_theta1": jax.random.normal(keys[5], (Cc, Cout), jnp.float32) * s,
        "w_theta2": jax.random.normal(keys[6], (Cout, Cout), jnp.float32) * s,
        "w_gamma1": jax.random.normal(keys[7], (Cout, Cout), jnp.float32) * s,
        "w_gamma2": jax.random.normal(keys[8], (Cout, Cout), jnp.float32) * s,
    }

    out = point_transformer_layer(features, coords, params, K)
    out = jax.block_until_ready(out)
    ref = reference_forward(features, coords, params, K)

    assert out.shape == (B, Cout, N), out.shape
    # bf16 MXU operands inside the kernel -> compare with bf16-class tolerance
    assert jnp.allclose(out, ref, atol=2e-2, rtol=2e-2), "mismatch vs reference"
    print("KERNEL_OK")
</pallas_src>

<mosaic_0001>
module attributes {stable_mosaic.version = 11 : i64} {
  func.func @point_transformer_kernel(%arg0: i32, %arg1: i32, %arg2: memref<1x8x16xbf16, #tpu.memory_space<vmem>>, %arg3: memref<1x8x8x16xbf16, #tpu.memory_space<vmem>>, %arg4: memref<1x8x8x16xbf16, #tpu.memory_space<vmem>>, %arg5: memref<16x8xbf16, #tpu.memory_space<vmem>>, %arg6: memref<32x8xbf16, #tpu.memory_space<vmem>>, %arg7: memref<16x8xbf16, #tpu.memory_space<vmem>>, %arg8: memref<16x16xbf16, #tpu.memory_space<vmem>>, %arg9: memref<16x16xbf16, #tpu.memory_space<vmem>>, %arg10: memref<16x16xbf16, #tpu.memory_space<vmem>>, %arg11: memref<1x16x16xf32, #tpu.memory_space<vmem>>) attributes {dimension_semantics = [#tpu.dimension_semantics<parallel>, #tpu.dimension_semantics<parallel>], iteration_bounds = array<i64: 2, 1>, scalar_prefetch = 0 : i64, scratch_operands = 0 : i64, tpu.core_type = #tpu.core_type<tc>, window_params = [{transform_indices = @transform_0, window_bounds = array<i64: 1, 8, 16>}, {transform_indices = @transform_1, window_bounds = array<i64: 1, 8, 8, 16>}, {transform_indices = @transform_2, window_bounds = array<i64: 1, 8, 8, 16>}, {pipeline_mode = #tpu.pipeline_mode<synchronous>, transform_indices = @transform_3, window_bounds = array<i64: 16, 8>}, {pipeline_mode = #tpu.pipeline_mode<synchronous>, transform_indices = @transform_4, window_bounds = array<i64: 32, 8>}, {pipeline_mode = #tpu.pipeline_mode<synchronous>, transform_indices = @transform_5, window_bounds = array<i64: 16, 8>}, {pipeline_mode = #tpu.pipeline_mode<synchronous>, transform_indices = @transform_6, window_bounds = array<i64: 16, 16>}, {pipeline_mode = #tpu.pipeline_mode<synchronous>, transform_indices = @transform_7, window_bounds = array<i64: 16, 16>}, {pipeline_mode = #tpu.pipeline_mode<synchronous>, transform_indices = @transform_8, window_bounds = array<i64: 16, 16>}, {transform_indices = @transform_9, window_bounds = array<i64: 1, 16, 16>}]} {
    %c0 = arith.constant 0 : index
    %c0_0 = arith.constant 0 : index
    %0 = vector.load %arg5[%c0, %c0_0] : memref<16x8xbf16, #tpu.memory_space<vmem>>, vector<16x8xbf16>
    %c0_1 = arith.constant 0 : index
    %c0_2 = arith.constant 0 : index
    %1 = vector.load %arg6[%c0_1, %c0_2] : memref<32x8xbf16, #tpu.memory_space<vmem>>, vector<32x8xbf16>
    %c0_3 = arith.constant 0 : index
    %c0_4 = arith.constant 0 : index
    %2 = vector.load %arg7[%c0_3, %c0_4] : memref<16x8xbf16, #tpu.memory_space<vmem>>, vector<16x8xbf16>
    %c0_5 = arith.constant 0 : index
    %c0_6 = arith.constant 0 : index
    %3 = vector.load %arg8[%c0_5, %c0_6] : memref<16x16xbf16, #tpu.memory_space<vmem>>, vector<16x16xbf16>
    %c0_7 = arith.constant 0 : index
    %c0_8 = arith.constant 0 : index
    %4 = vector.load %arg9[%c0_7, %c0_8] : memref<16x16xbf16, #tpu.memory_space<vmem>>, vector<16x16xbf16>
    %c0_9 = arith.constant 0 : index
    %c0_10 = arith.constant 0 : index
    %5 = vector.load %arg10[%c0_9, %c0_10] : memref<16x16xbf16, #tpu.memory_space<vmem>>, vector<16x16xbf16>
    %c0_11 = arith.constant 0 : index
    %c0_12 = arith.constant 0 : index
    %c0_13 = arith.constant 0 : index
    %6 = vector.load %arg2[%c0_11, %c0_12, %c0_13] : memref<1x8x16xbf16, #tpu.memory_space<vmem>>, vector<1x8x16xbf16>
    %7 = vector.shape_cast %6 : vector<1x8x16xbf16> to vector<8x16xbf16>
    %cst = arith.constant dense<0.000000e+00> : vector<16x16xf32>
    %8 = tpu.matmul %0, %7, %cst {dimension_numbers = #tpu.dot_dimension_numbers<[1], [0], [0], [1], [0, 0, 1, 1], [], []>} : vector<16x8xbf16>, vector<8x16xbf16>, vector<16x16xf32> -> vector<16x16xf32>
    %c0_14 = arith.constant 0 : index
    %c0_15 = arith.constant 0 : index
    %c0_16 = arith.constant 0 : index
    %c0_17 = arith.constant 0 : index
    %9 = vector.load %arg3[%c0_14, %c0_15, %c0_16, %c0_17] : memref<1x8x8x16xbf16, #tpu.memory_space<vmem>>, vector<1x1x8x16xbf16>
    %10 = vector.shape_cast %9 : vector<1x1x8x16xbf16> to vector<8x16xbf16>
    %c0_18 = arith.constant 0 : index
    %c0_19 = arith.constant 0 : index
    %c0_20 = arith.constant 0 : index
    %c0_21 = arith.constant 0 : index
    %11 = vector.load %arg4[%c0_18, %c0_19, %c0_20, %c0_21] : memref<1x8x8x16xbf16, #tpu.memory_space<vmem>>, vector<1x1x8x16xbf16>
    %12 = vector.shape_cast %11 : vector<1x1x8x16xbf16> to vector<8x16xbf16>
    %cst_22 = arith.constant dense<0.000000e+00> : vector<32x16xf32>
    %13 = tpu.matmul %1, %10, %cst_22 {dimension_numbers = #tpu.dot_dimension_numbers<[1], [0], [0], [1], [0, 0, 1, 1], [], []>} : vector<32x8xbf16>, vector<8x16xbf16>, vector<32x16xf32> -> vector<32x16xf32>
    %14 = vector.extract_strided_slice %13 {offsets = [0, 0], sizes = [16, 16], strides = [1, 1]} : vector<32x16xf32> to vector<16x16xf32>
    %15 = vector.extract_strided_slice %13 {offsets = [16, 0], sizes = [16, 16], strides = [1, 1]} : vector<32x16xf32> to vector<16x16xf32>
    %cst_23 = arith.constant dense<0.000000e+00> : vector<16x16xf32>
    %16 = tpu.matmul %2, %12, %cst_23 {dimension_numbers = #tpu.dot_dimension_numbers<[1], [0], [0], [1], [0, 0, 1, 1], [], []>} : vector<16x8xbf16>, vector<8x16xbf16>, vector<16x16xf32> -> vector<16x16xf32>
    %cst_24 = arith.constant 0.000000e+00 : f32
    %17 = vector.broadcast %cst_24 : f32 to vector<16x16xf32>
    %18 = arith.maximumf %16, %17 : vector<16x16xf32>
    %19 = arith.truncf %18 : vector<16x16xf32> to vector<16x16xbf16>
    %cst_25 = arith.constant dense<0.000000e+00> : vector<16x16xf32>
    %20 = tpu.matmul %3, %19, %cst_25 {dimension_numbers = #tpu.dot_dimension_numbers<[1], [0], [0], [1], [0, 0, 1, 1], [], []>} : vector<16x16xbf16>, vector<16x16xbf16>, vector<16x16xf32> -> vector<16x16xf32>
    %21 = arith.subf %8, %14 : vector<16x16xf32>
    %22 = arith.addf %21, %20 : vector<16x16xf32>
    %23 = arith.truncf %22 : vector<16x16xf32> to vector<16x16xbf16>
    %cst_26 = arith.constant dense<0.000000e+00> : vector<16x16xf32>
    %24 = tpu.matmul %4, %23, %cst_26 {dimension_numbers = #tpu.dot_dimension_numbers<[1], [0], [0], [1], [0, 0, 1, 1], [], []>} : vector<16x16xbf16>, vector<16x16xbf16>, vector<16x16xf32> -> vector<16x16xf32>
    %cst_27 = arith.constant 0.000000e+00 : f32
    %25 = vector.broadcast %cst_27 : f32 to vector<16x16xf32>
    %26 = arith.maximumf %24, %25 : vector<16x16xf32>
    %27 = arith.truncf %26 : vector<16x16xf32> to vector<16x16xbf16>
    %cst_28 = arith.constant dense<0.000000e+00> : vector<16x16xf32>
    %28 = tpu.matmul %5, %27, %cst_28 {dimension_numbers = #tpu.dot_dimension_numbers<[1], [0], [0], [1], [0, 0, 1, 1], [], []>} : vector<16x16xbf16>, vector<16x16xbf16>, vector<16x16xf32> -> vector<16x16xf32>
    %29 = arith.addf %15, %20 : vector<16x16xf32>
    %c0_29 = arith.constant 0 : index
    %c1 = arith.constant 1 : index
    %c0_30 = arith.constant 0 : index
    %c0_31 = arith.constant 0 : index
    %30 = vector.load %arg3[%c0_29, %c1, %c0_30, %c0_31] : memref<1x8x8x16xbf16, #tpu.memory_space<vmem>>, vector<1x1x8x16xbf16>
    %31 = vector.shape_cast %30 : vector<1x1x8x16xbf16> to vector<8x16xbf16>
    %c0_32 = arith.constant 0 : index
    %c1_33 = arith.constant 1 : index
    %c0_34 = arith.constant 0 : index
    %c0_35 = arith.constant 0 : index
    %32 = vector.load %arg4[%c0_32, %c1_33, %c0_34, %c0_35] : memref<1x8x8x16xbf16, #tpu.memory_space<vmem>>, vector<1x1x8x16xbf16>
    %33 = vector.shape_cast %32 : vector<1x1x8x16xbf16> to vector<8x16xbf16>
    %cst_36 = arith.constant dense<0.000000e+00> : vector<32x16xf32>
    %34 = tpu.matmul %1, %31, %cst_36 {dimension_numbers = #tpu.dot_dimension_numbers<[1], [0], [0], [1], [0, 0, 1, 1], [], []>} : vector<32x8xbf16>, vector<8x16xbf16>, vector<32x16xf32> -> vector<32x16xf32>
    %35 = vector.extract_strided_slice %34 {offsets = [0, 0], sizes = [16, 16], strides = [1, 1]} : vector<32x16xf32> to vector<16x16xf32>
    %36 = vector.extract_strided_slice %34 {offsets = [16, 0], sizes = [16, 16], strides = [1, 1]} : vector<32x16xf32> to vector<16x16xf32>
    %cst_37 = arith.constant dense<0.000000e+00> : vector<16x16xf32>
    %37 = tpu.matmul %2, %33, %cst_37 {dimension_numbers = #tpu.dot_dimension_numbers<[1], [0], [0], [1], [0, 0, 1, 1], [], []>} : vector<16x8xbf16>, vector<8x16xbf16>, vector<16x16xf32> -> vector<16x16xf32>
    %cst_38 = arith.constant 0.000000e+00 : f32
    %38 = vector.broadcast %cst_38 : f32 to vector<16x16xf32>
    %39 = arith.maximumf %37, %38 : vector<16x16xf32>
    %40 = arith.truncf %39 : vector<16x16xf32> to vector<16x16xbf16>
    %cst_39 = arith.constant dense<0.000000e+00> : vector<16x16xf32>
    %41 = tpu.matmul %3, %40, %cst_39 {dimension_numbers = #tpu.dot_dimension_numbers<[1], [0], [0], [1], [0, 0, 1, 1], [], []>} : vector<16x16xbf16>, vector<16x16xbf16>, vector<16x16xf32> -> vector<16x16xf32>
    %42 = arith.subf %8, %35 : vector<16x16xf32>
    %43 = arith.addf %42, %41 : vector<16x16xf32>
    %44 = arith.truncf %43 : vector<16x16xf32> to vector<16x16xbf16>
    %cst_40 = arith.constant dense<0.000000e+00> : vector<16x16xf32>
    %45 = tpu.matmul %4, %44, %cst_40 {dimension_numbers = #tpu.dot_dimension_numbers<[1], [0], [0], [1], [0, 0, 1, 1], [], []>} : vector<16x16xbf16>, vector<16x16xbf16>, vector<16x16xf32> -> vector<16x16xf32>
    %cst_41 = arith.constant 0.000000e+00 : f32
    %46 = vector.broadcast %cst_41 : f32 to vector<16x16xf32>
    %47 = arith.maximumf %45, %46 : vector<16x16xf32>
    %48 = arith.truncf %47 : vector<16x16xf32> to vector<16x16xbf16>
    %cst_42 = arith.constant dense<0.000000e+00> : vector<16x16xf32>
    %49 = tpu.matmul %5, %48, %cst_42 {dimension_numbers = #tpu.dot_dimension_numbers<[1], [0], [0], [1], [0, 0, 1, 1], [], []>} : vector<16x16xbf16>, vector<16x16xbf16>, vector<16x16xf32> -> vector<16x16xf32>
    %50 = arith.addf %36, %41 : vector<16x16xf32>
    %c0_43 = arith.constant 0 : index
    %c2 = arith.constant 2 : index
    %c0_44 = arith.constant 0 : index
    %c0_45 = arith.constant 0 : index
    %51 = vector.load %arg3[%c0_43, %c2, %c0_44, %c0_45] : memref<1x8x8x16xbf16, #tpu.memory_space<vmem>>, vector<1x1x8x16xbf16>
    %52 = vector.shape_cast %51 : vector<1x1x8x16xbf16> to vector<8x16xbf16>
    %c0_46 = arith.constant 0 : index
    %c2_47 = arith.constant 2 : index
    %c0_48 = arith.constant 0 : index
    %c0_49 = arith.constant 0 : index
    %53 = vector.load %arg4[%c0_46, %c2_47, %c0_48, %c0_49] : memref<1x8x8x16xbf16, #tpu.memory_space<vmem>>, vector<1x1x8x16xbf16>
    %54 = vector.shape_cast %53 : vector<1x1x8x16xbf16> to vector<8x16xbf16>
    %cst_50 = arith.constant dense<0.000000e+00> : vector<32x16xf32>
    %55 = tpu.matmul %1, %52, %cst_50 {dimension_numbers = #tpu.dot_dimension_numbers<[1], [0], [0], [1], [0, 0, 1, 1], [], []>} : vector<32x8xbf16>, vector<8x16xbf16>, vector<32x16xf32> -> vector<32x16xf32>
    %56 = vector.extract_strided_slice %55 {offsets = [0, 0], sizes = [16, 16], strides = [1, 1]} : vector<32x16xf32> to vector<16x16xf32>
    %57 = vector.extract_strided_slice %55 {offsets = [16, 0], sizes = [16, 16], strides = [1, 1]} : vector<32x16xf32> to vector<16x16xf32>
    %cst_51 = arith.constant dense<0.000000e+00> : vector<16x16xf32>
    %58 = tpu.matmul %2, %54, %cst_51 {dimension_numbers = #tpu.dot_dimension_numbers<[1], [0], [0], [1], [0, 0, 1, 1], [], []>} : vector<16x8xbf16>, vector<8x16xbf16>, vector<16x16xf32> -> vector<16x16xf32>
    %cst_52 = arith.constant 0.000000e+00 : f32
    %59 = vector.broadcast %cst_52 : f32 to vector<16x16xf32>
    %60 = arith.maximumf %58, %59 : vector<16x16xf32>
    %61 = arith.truncf %60 : vector<16x16xf32> to vector<16x16xbf16>
    %cst_53 = arith.constant dense<0.000000e+00> : vector<16x16xf32>
    %62 = tpu.matmul %3, %61, %cst_53 {dimension_numbers = #tpu.dot_dimension_numbers<[1], [0], [0], [1], [0, 0, 1, 1], [], []>} : vector<16x16xbf16>, vector<16x16xbf16>, vector<16x16xf32> -> vector<16x16xf32>
    %63 = arith.subf %8, %56 : vector<16x16xf32>
    %64 = arith.addf %63, %62 : vector<16x16xf32>
    %65 = arith.truncf %64 : vector<16x16xf32> to vector<16x16xbf16>
    %cst_54 = arith.constant dense<0.000000e+00> : vector<16x16xf32>
    %66 = tpu.matmul %4, %65, %cst_54 {dimension_numbers = #tpu.dot_dimension_numbers<[1], [0], [0], [1], [0, 0, 1, 1], [], []>} : vector<16x16xbf16>, vector<16x16xbf16>, vector<16x16xf32> -> vector<16x16xf32>
    %cst_55 = arith.constant 0.000000e+00 : f32
    %67 = vector.broadcast %cst_55 : f32 to vector<16x16xf32>
    %68 = arith.maximumf %66, %67 : vector<16x16xf32>
    %69 = arith.truncf %68 : vector<16x16xf32> to vector<16x16xbf16>
    %cst_56 = arith.constant dense<0.000000e+00> : vector<16x16xf32>
    %70 = tpu.matmul %5, %69, %cst_56 {dimension_numbers = #tpu.dot_dimension_numbers<[1], [0], [0], [1], [0, 0, 1, 1], [], []>} : vector<16x16xbf16>, vector<16x16xbf16>, vector<16x16xf32> -> vector<16x16xf32>
    %71 = arith.addf %57, %62 : vector<16x16xf32>
    %c0_57 = arith.constant 0 : index
    %c3 = arith.constant 3 : index
    %c0_58 = arith.constant 0 : index
    %c0_59 = arith.constant 0 : index
    %72 = vector.load %arg3[%c0_57, %c3, %c0_58, %c0_59] : memref<1x8x8x16xbf16, #tpu.memory_space<vmem>>, vector<1x1x8x16xbf16>
    %73 = vector.shape_cast %72 : vector<1x1x8x16xbf16> to vector<8x16xbf16>
    %c0_60 = arith.constant 0 : index
    %c3_61 = arith.constant 3 : index
    %c0_62 = arith.constant 0 : index
    %c0_63 = arith.constant 0 : index
    %74 = vector.load %arg4[%c0_60, %c3_61, %c0_62, %c0_63] : memref<1x8x8x16xbf16, #tpu.memory_space<vmem>>, vector<1x1x8x16xbf16>
    %75 = vector.shape_cast %74 : vector<1x1x8x16xbf16> to vector<8x16xbf16>
    %cst_64 = arith.constant dense<0.000000e+00> : vector<32x16xf32>
    %76 = tpu.matmul %1, %73, %cst_64 {dimension_numbers = #tpu.dot_dimension_numbers<[1], [0], [0], [1], [0, 0, 1, 1], [], []>} : vector<32x8xbf16>, vector<8x16xbf16>, vector<32x16xf32> -> vector<32x16xf32>
    %77 = vector.extract_strided_slice %76 {offsets = [0, 0], sizes = [16, 16], strides = [1, 1]} : vector<32x16xf32> to vector<16x16xf32>
    %78 = vector.extract_strided_slice %76 {offsets = [16, 0], sizes = [16, 16], strides = [1, 1]} : vector<32x16xf32> to vector<16x16xf32>
    %cst_65 = arith.constant dense<0.000000e+00> : vector<16x16xf32>
    %79 = tpu.matmul %2, %75, %cst_65 {dimension_numbers = #tpu.dot_dimension_numbers<[1], [0], [0], [1], [0, 0, 1, 1], [], []>} : vector<16x8xbf16>, vector<8x16xbf16>, vector<16x16xf32> -> vector<16x16xf32>
    %cst_66 = arith.constant 0.000000e+00 : f32
    %80 = vector.broadcast %cst_66 : f32 to vector<16x16xf32>
    %81 = arith.maximumf %79, %80 : vector<16x16xf32>
    %82 = arith.truncf %81 : vector<16x16xf32> to vector<16x16xbf16>
    %cst_67 = arith.constant dense<0.000000e+00> : vector<16x16xf32>
    %83 = tpu.matmul %3, %82, %cst_67 {dimension_numbers = #tpu.dot_dimension_numbers<[1], [0], [0], [1], [0, 0, 1, 1], [], []>} : vector<16x16xbf16>, vector<16x16xbf16>, vector<16x16xf32> -> vector<16x16xf32>
    %84 = arith.subf %8, %77 : vector<16x16xf32>
    %85 = arith.addf %84, %83 : vector<16x16xf32>
    %86 = arith.truncf %85 : vector<16x16xf32> to vector<16x16xbf16>
    %cst_68 = arith.constant dense<0.000000e+00> : vector<16x16xf32>
    %87 = tpu.matmul %4, %86, %cst_68 {dimension_numbers = #tpu.dot_dimension_numbers<[1], [0], [0], [1], [0, 0, 1, 1], [], []>} : vector<16x16xbf16>, vector<16x16xbf16>, vector<16x16xf32> -> vector<16x16xf32>
    %cst_69 = arith.constant 0.000000e+00 : f32
    %88 = vector.broadcast %cst_69 : f32 to vector<16x16xf32>
    %89 = arith.maximumf %87, %88 : vector<16x16xf32>
    %90 = arith.truncf %89 : vector<16x16xf32> to vector<16x16xbf16>
    %cst_70 = arith.constant dense<0.000000e+00> : vector<16x16xf32>
    %91 = tpu.matmul %5, %90, %cst_70 {dimension_numbers = #tpu.dot_dimension_numbers<[1], [0], [0], [1], [0, 0, 1, 1], [], []>} : vector<16x16xbf16>, vector<16x16xbf16>, vector<16x16xf32> -> vector<16x16xf32>
    %92 = arith.addf %78, %83 : vector<16x16xf32>
    %c0_71 = arith.constant 0 : index
    %c4 = arith.constant 4 : index
    %c0_72 = arith.constant 0 : index
    %c0_73 = arith.constant 0 : index
    %93 = vector.load %arg3[%c0_71, %c4, %c0_72, %c0_73] : memref<1x8x8x16xbf16, #tpu.memory_space<vmem>>, vector<1x1x8x16xbf16>
    %94 = vector.shape_cast %93 : vector<1x1x8x16xbf16> to vector<8x16xbf16>
    %c0_74 = arith.constant 0 : index
    %c4_75 = arith.constant 4 : index
    %c0_76 = arith.constant 0 : index
    %c0_77 = arith.constant 0 : index
    %95 = vector.load %arg4[%c0_74, %c4_75, %c0_76, %c0_77] : memref<1x8x8x16xbf16, #tpu.memory_space<vmem>>, vector<1x1x8x16xbf16>
    %96 = vector.shape_cast %95 : vector<1x1x8x16xbf16> to vector<8x16xbf16>
    %cst_78 = arith.constant dense<0.000000e+00> : vector<32x16xf32>
    %97 = tpu.matmul %1, %94, %cst_78 {dimension_numbers = #tpu.dot_dimension_numbers<[1], [0], [0], [1], [0, 0, 1, 1], [], []>} : vector<32x8xbf16>, vector<8x16xbf16>, vector<32x16xf32> -> vector<32x16xf32>
    %98 = vector.extract_strided_slice %97 {offsets = [0, 0], sizes = [16, 16], strides = [1, 1]} : vector<32x16xf32> to vector<16x16xf32>
    %99 = vector.extract_strided_slice %97 {offsets = [16, 0], sizes = [16, 16], strides = [1, 1]} : vector<32x16xf32> to vector<16x16xf32>
    %cst_79 = arith.constant dense<0.000000e+00> : vector<16x16xf32>
    %100 = tpu.matmul %2, %96, %cst_79 {dimension_numbers = #tpu.dot_dimension_numbers<[1], [0], [0], [1], [0, 0, 1, 1], [], []>} : vector<16x8xbf16>, vector<8x16xbf16>, vector<16x16xf32> -> vector<16x16xf32>
    %cst_80 = arith.constant 0.000000e+00 : f32
    %101 = vector.broadcast %cst_80 : f32 to vector<16x16xf32>
    %102 = arith.maximumf %100, %101 : vector<16x16xf32>
    %103 = arith.truncf %102 : vector<16x16xf32> to vector<16x16xbf16>
    %cst_81 = arith.constant dense<0.000000e+00> : vector<16x16xf32>
    %104 = tpu.matmul %3, %103, %cst_81 {dimension_numbers = #tpu.dot_dimension_numbers<[1], [0], [0], [1], [0, 0, 1, 1], [], []>} : vector<16x16xbf16>, vector<16x16xbf16>, vector<16x16xf32> -> vector<16x16xf32>
    %105 = arith.subf %8, %98 : vector<16x16xf32>
    %106 = arith.addf %105, %104 : vector<16x16xf32>
    %107 = arith.truncf %106 : vector<16x16xf32> to vector<16x16xbf16>
    %cst_82 = arith.constant dense<0.000000e+00> : vector<16x16xf32>
    %108 = tpu.matmul %4, %107, %cst_82 {dimension_numbers = #tpu.dot_dimension_numbers<[1], [0], [0], [1], [0, 0, 1, 1], [], []>} : vector<16x16xbf16>, vector<16x16xbf16>, vector<16x16xf32> -> vector<16x16xf32>
    %cst_83 = arith.constant 0.000000e+00 : f32
    %109 = vector.broadcast %cst_83 : f32 to vector<16x16xf32>
    %110 = arith.maximumf %108, %109 : vector<16x16xf32>
    %111 = arith.truncf %110 : vector<16x16xf32> to vector<16x16xbf16>
    %cst_84 = arith.constant dense<0.000000e+00> : vector<16x16xf32>
    %112 = tpu.matmul %5, %111, %cst_84 {dimension_numbers = #tpu.dot_dimension_numbers<[1], [0], [0], [1], [0, 0, 1, 1], [], []>} : vector<16x16xbf16>, vector<16x16xbf16>, vector<16x16xf32> -> vector<16x16xf32>
    %113 = arith.addf %99, %104 : vector<16x16xf32>
    %c0_85 = arith.constant 0 : index
    %c5 = arith.constant 5 : index
    %c0_86 = arith.constant 0 : index
    %c0_87 = arith.constant 0 : index
    %114 = vector.load %arg3[%c0_85, %c5, %c0_86, %c0_87] : memref<1x8x8x16xbf16, #tpu.memory_space<vmem>>, vector<1x1x8x16xbf16>
    %115 = vector.shape_cast %114 : vector<1x1x8x16xbf16> to vector<8x16xbf16>
    %c0_88 = arith.constant 0 : index
    %c5_89 = arith.constant 5 : index
    %c0_90 = arith.constant 0 : index
    %c0_91 = arith.constant 0 : index
    %116 = vector.load %arg4[%c0_88, %c5_89, %c0_90, %c0_91] : memref<1x8x8x16xbf16, #tpu.memory_space<vmem>>, vector<1x1x8x16xbf16>
    %117 = vector.shape_cast %116 : vector<1x1x8x16xbf16> to vector<8x16xbf16>
    %cst_92 = arith.constant dense<0.000000e+00> : vector<32x16xf32>
    %118 = tpu.matmul %1, %115, %cst_92 {dimension_numbers = #tpu.dot_dimension_numbers<[1], [0], [0], [1], [0, 0, 1, 1], [], []>} : vector<32x8xbf16>, vector<8x16xbf16>, vector<32x16xf32> -> vector<32x16xf32>
    %119 = vector.extract_strided_slice %118 {offsets = [0, 0], sizes = [16, 16], strides = [1, 1]} : vector<32x16xf32> to vector<16x16xf32>
    %120 = vector.extract_strided_slice %118 {offsets = [16, 0], sizes = [16, 16], strides = [1, 1]} : vector<32x16xf32> to vector<16x16xf32>
    %cst_93 = arith.constant dense<0.000000e+00> : vector<16x16xf32>
    %121 = tpu.matmul %2, %117, %cst_93 {dimension_numbers = #tpu.dot_dimension_numbers<[1], [0], [0], [1], [0, 0, 1, 1], [], []>} : vector<16x8xbf16>, vector<8x16xbf16>, vector<16x16xf32> -> vector<16x16xf32>
    %cst_94 = arith.constant 0.000000e+00 : f32
    %122 = vector.broadcast %cst_94 : f32 to vector<16x16xf32>
    %123 = arith.maximumf %121, %122 : vector<16x16xf32>
    %124 = arith.truncf %123 : vector<16x16xf32> to vector<16x16xbf16>
    %cst_95 = arith.constant dense<0.000000e+00> : vector<16x16xf32>
    %125 = tpu.matmul %3, %124, %cst_95 {dimension_numbers = #tpu.dot_dimension_numbers<[1], [0], [0], [1], [0, 0, 1, 1], [], []>} : vector<16x16xbf16>, vector<16x16xbf16>, vector<16x16xf32> -> vector<16x16xf32>
    %126 = arith.subf %8, %119 : vector<16x16xf32>
    %127 = arith.addf %126, %125 : vector<16x16xf32>
    %128 = arith.truncf %127 : vector<16x16xf32> to vector<16x16xbf16>
    %cst_96 = arith.constant dense<0.000000e+00> : vector<16x16xf32>
    %129 = tpu.matmul %4, %128, %cst_96 {dimension_numbers = #tpu.dot_dimension_numbers<[1], [0], [0], [1], [0, 0, 1, 1], [], []>} : vector<16x16xbf16>, vector<16x16xbf16>, vector<16x16xf32> -> vector<16x16xf32>
    %cst_97 = arith.constant 0.000000e+00 : f32
    %130 = vector.broadcast %cst_97 : f32 to vector<16x16xf32>
    %131 = arith.maximumf %129, %130 : vector<16x16xf32>
    %132 = arith.truncf %131 : vector<16x16xf32> to vector<16x16xbf16>
    %cst_98 = arith.constant dense<0.000000e+00> : vector<16x16xf32>
    %133 = tpu.matmul %5, %132, %cst_98 {dimension_numbers = #tpu.dot_dimension_numbers<[1], [0], [0], [1], [0, 0, 1, 1], [], []>} : vector<16x16xbf16>, vector<16x16xbf16>, vector<16x16xf32> -> vector<16x16xf32>
    %134 = arith.addf %120, %125 : vector<16x16xf32>
    %c0_99 = arith.constant 0 : index
    %c6 = arith.constant 6 : index
    %c0_100 = arith.constant 0 : index
    %c0_101 = arith.constant 0 : index
    %135 = vector.load %arg3[%c0_99, %c6, %c0_100, %c0_101] : memref<1x8x8x16xbf16, #tpu.memory_space<vmem>>, vector<1x1x8x16xbf16>
    %136 = vector.shape_cast %135 : vector<1x1x8x16xbf16> to vector<8x16xbf16>
    %c0_102 = arith.constant 0 : index
    %c6_103 = arith.constant 6 : index
    %c0_104 = arith.constant 0 : index
    %c0_105 = arith.constant 0 : index
    %137 = vector.load %arg4[%c0_102, %c6_103, %c0_104, %c0_105] : memref<1x8x8x16xbf16, #tpu.memory_space<vmem>>, vector<1x1x8x16xbf16>
    %138 = vector.shape_cast %137 : vector<1x1x8x16xbf16> to vector<8x16xbf16>
    %cst_106 = arith.constant dense<0.000000e+00> : vector<32x16xf32>
    %139 = tpu.matmul %1, %136, %cst_106 {dimension_numbers = #tpu.dot_dimension_numbers<[1], [0], [0], [1], [0, 0, 1, 1], [], []>} : vector<32x8xbf16>, vector<8x16xbf16>, vector<32x16xf32> -> vector<32x16xf32>
    %140 = vector.extract_strided_slice %139 {offsets = [0, 0], sizes = [16, 16], strides = [1, 1]} : vector<32x16xf32> to vector<16x16xf32>
    %141 = vector.extract_strided_slice %139 {offsets = [16, 0], sizes = [16, 16], strides = [1, 1]} : vector<32x16xf32> to vector<16x16xf32>
    %cst_107 = arith.constant dense<0.000000e+00> : vector<16x16xf32>
    %142 = tpu.matmul %2, %138, %cst_107 {dimension_numbers = #tpu.dot_dimension_numbers<[1], [0], [0], [1], [0, 0, 1, 1], [], []>} : vector<16x8xbf16>, vector<8x16xbf16>, vector<16x16xf32> -> vector<16x16xf32>
    %cst_108 = arith.constant 0.000000e+00 : f32
    %143 = vector.broadcast %cst_108 : f32 to vector<16x16xf32>
    %144 = arith.maximumf %142, %143 : vector<16x16xf32>
    %145 = arith.truncf %144 : vector<16x16xf32> to vector<16x16xbf16>
    %cst_109 = arith.constant dense<0.000000e+00> : vector<16x16xf32>
    %146 = tpu.matmul %3, %145, %cst_109 {dimension_numbers = #tpu.dot_dimension_numbers<[1], [0], [0], [1], [0, 0, 1, 1], [], []>} : vector<16x16xbf16>, vector<16x16xbf16>, vector<16x16xf32> -> vector<16x16xf32>
    %147 = arith.subf %8, %140 : vector<16x16xf32>
    %148 = arith.addf %147, %146 : vector<16x16xf32>
    %149 = arith.truncf %148 : vector<16x16xf32> to vector<16x16xbf16>
    %cst_110 = arith.constant dense<0.000000e+00> : vector<16x16xf32>
    %150 = tpu.matmul %4, %149, %cst_110 {dimension_numbers = #tpu.dot_dimension_numbers<[1], [0], [0], [1], [0, 0, 1, 1], [], []>} : vector<16x16xbf16>, vector<16x16xbf16>, vector<16x16xf32> -> vector<16x16xf32>
    %cst_111 = arith.constant 0.000000e+00 : f32
    %151 = vector.broadcast %cst_111 : f32 to vector<16x16xf32>
    %152 = arith.maximumf %150, %151 : vector<16x16xf32>
    %153 = arith.truncf %152 : vector<16x16xf32> to vector<16x16xbf16>
    %cst_112 = arith.constant dense<0.000000e+00> : vector<16x16xf32>
    %154 = tpu.matmul %5, %153, %cst_112 {dimension_numbers = #tpu.dot_dimension_numbers<[1], [0], [0], [1], [0, 0, 1, 1], [], []>} : vector<16x16xbf16>, vector<16x16xbf16>, vector<16x16xf32> -> vector<16x16xf32>
    %155 = arith.addf %141, %146 : vector<16x16xf32>
    %c0_113 = arith.constant 0 : index
    %c7 = arith.constant 7 : index
    %c0_114 = arith.constant 0 : index
    %c0_115 = arith.constant 0 : index
    %156 = vector.load %arg3[%c0_113, %c7, %c0_114, %c0_115] : memref<1x8x8x16xbf16, #tpu.memory_space<vmem>>, vector<1x1x8x16xbf16>
    %157 = vector.shape_cast %156 : vector<1x1x8x16xbf16> to vector<8x16xbf16>
    %c0_116 = arith.constant 0 : index
    %c7_117 = arith.constant 7 : index
    %c0_118 = arith.constant 0 : index
    %c0_119 = arith.constant 0 : index
    %158 = vector.load %arg4[%c0_116, %c7_117, %c0_118, %c0_119] : memref<1x8x8x16xbf16, #tpu.memory_space<vmem>>, vector<1x1x8x16xbf16>
    %159 = vector.shape_cast %158 : vector<1x1x8x16xbf16> to vector<8x16xbf16>
    %cst_120 = arith.constant dense<0.000000e+00> : vector<32x16xf32>
    %160 = tpu.matmul %1, %157, %cst_120 {dimension_numbers = #tpu.dot_dimension_numbers<[1], [0], [0], [1], [0, 0, 1, 1], [], []>} : vector<32x8xbf16>, vector<8x16xbf16>, vector<32x16xf32> -> vector<32x16xf32>
    %161 = vector.extract_strided_slice %160 {offsets = [0, 0], sizes = [16, 16], strides = [1, 1]} : vector<32x16xf32> to vector<16x16xf32>
    %162 = vector.extract_strided_slice %160 {offsets = [16, 0], sizes = [16, 16], strides = [1, 1]} : vector<32x16xf32> to vector<16x16xf32>
    %cst_121 = arith.constant dense<0.000000e+00> : vector<16x16xf32>
    %163 = tpu.matmul %2, %159, %cst_121 {dimension_numbers = #tpu.dot_dimension_numbers<[1], [0], [0], [1], [0, 0, 1, 1], [], []>} : vector<16x8xbf16>, vector<8x16xbf16>, vector<16x16xf32> -> vector<16x16xf32>
    %cst_122 = arith.constant 0.000000e+00 : f32
    %164 = vector.broadcast %cst_122 : f32 to vector<16x16xf32>
    %165 = arith.maximumf %163, %164 : vector<16x16xf32>
    %166 = arith.truncf %165 : vector<16x16xf32> to vector<16x16xbf16>
    %cst_123 = arith.constant dense<0.000000e+00> : vector<16x16xf32>
    %167 = tpu.matmul %3, %166, %cst_123 {dimension_numbers = #tpu.dot_dimension_numbers<[1], [0], [0], [1], [0, 0, 1, 1], [], []>} : vector<16x16xbf16>, vector<16x16xbf16>, vector<16x16xf32> -> vector<16x16xf32>
    %168 = arith.subf %8, %161 : vector<16x16xf32>
    %169 = arith.addf %168, %167 : vector<16x16xf32>
    %170 = arith.truncf %169 : vector<16x16xf32> to vector<16x16xbf16>
    %cst_124 = arith.constant dense<0.000000e+00> : vector<16x16xf32>
    %171 = tpu.matmul %4, %170, %cst_124 {dimension_numbers = #tpu.dot_dimension_numbers<[1], [0], [0], [1], [0, 0, 1, 1], [], []>} : vector<16x16xbf16>, vector<16x16xbf16>, vector<16x16xf32> -> vector<16x16xf32>
    %cst_125 = arith.constant 0.000000e+00 : f32
    %172 = vector.broadcast %cst_125 : f32 to vector<16x16xf32>
    %173 = arith.maximumf %171, %172 : vector<16x16xf32>
    %174 = arith.truncf %173 : vector<16x16xf32> to vector<16x16xbf16>
    %cst_126 = arith.constant dense<0.000000e+00> : vector<16x16xf32>
    %175 = tpu.matmul %5, %174, %cst_126 {dimension_numbers = #tpu.dot_dimension_numbers<[1], [0], [0], [1], [0, 0, 1, 1], [], []>} : vector<16x16xbf16>, vector<16x16xbf16>, vector<16x16xf32> -> vector<16x16xf32>
    %176 = arith.addf %162, %167 : vector<16x16xf32>
    %177 = arith.maximumf %28, %49 : vector<16x16xf32>
    %178 = arith.maximumf %177, %70 : vector<16x16xf32>
    %179 = arith.maximumf %178, %91 : vector<16x16xf32>
    %180 = arith.maximumf %179, %112 : vector<16x16xf32>
    %181 = arith.maximumf %180, %133 : vector<16x16xf32>
    %182 = arith.maximumf %181, %154 : vector<16x16xf32>
    %183 = arith.maximumf %182, %175 : vector<16x16xf32>
    %184 = arith.subf %28, %183 : vector<16x16xf32>
    %185 = math.exp %184 : vector<16x16xf32>
    %186 = arith.subf %49, %183 : vector<16x16xf32>
    %187 = math.exp %186 : vector<16x16xf32>
    %188 = arith.subf %70, %183 : vector<16x16xf32>
    %189 = math.exp %188 : vector<16x16xf32>
    %190 = arith.subf %91, %183 : vector<16x16xf32>
    %191 = math.exp %190 : vector<16x16xf32>
    %192 = arith.subf %112, %183 : vector<16x16xf32>
    %193 = math.exp %192 : vector<16x16xf32>
    %194 = arith.subf %133, %183 : vector<16x16xf32>
    %195 = math.exp %194 : vector<16x16xf32>
    %196 = arith.subf %154, %183 : vector<16x16xf32>
    %197 = math.exp %196 : vector<16x16xf32>
    %198 = arith.subf %175, %183 : vector<16x16xf32>
    %199 = math.exp %198 : vector<16x16xf32>
    %200 = arith.addf %185, %187 : vector<16x16xf32>
    %201 = arith.addf %200, %189 : vector<16x16xf32>
    %202 = arith.addf %201, %191 : vector<16x16xf32>
    %203 = arith.addf %202, %193 : vector<16x16xf32>
    %204 = arith.addf %203, %195 : vector<16x16xf32>
    %205 = arith.addf %204, %197 : vector<16x16xf32>
    %206 = arith.addf %205, %199 : vector<16x16xf32>
    %207 = tpu.reciprocal %206 {approx = true} : vector<16x16xf32> -> vector<16x16xf32>
    %208 = arith.mulf %185, %29 : vector<16x16xf32>
    %209 = arith.mulf %187, %50 : vector<16x16xf32>
    %210 = arith.addf %208, %209 : vector<16x16xf32>
    %211 = arith.mulf %189, %71 : vector<16x16xf32>
    %212 = arith.addf %210, %211 : vector<16x16xf32>
    %213 = arith.mulf %191, %92 : vector<16x16xf32>
    %214 = arith.addf %212, %213 : vector<16x16xf32>
    %215 = arith.mulf %193, %113 : vector<16x16xf32>
    %216 = arith.addf %214, %215 : vector<16x16xf32>
    %217 = arith.mulf %195, %134 : vector<16x16xf32>
    %218 = arith.addf %216, %217 : vector<16x16xf32>
    %219 = arith.mulf %197, %155 : vector<16x16xf32>
    %220 = arith.addf %218, %219 : vector<16x16xf32>
    %221 = arith.mulf %199, %176 : vector<16x16xf32>
    %222 = arith.addf %220, %221 : vector<16x16xf32>
    %223 = arith.mulf %222, %207 : vector<16x16xf32>
    %c0_127 = arith.constant 0 : index
    %c0_128 = arith.constant 0 : index
    %c0_129 = arith.constant 0 : index
    %224 = vector.load %arg11[%c0_127, %c0_128, %c0_129] : memref<1x16x16xf32, #tpu.memory_space<vmem>>, vector<1x16x16xf32>
    %225 = vector.shape_cast %224 : vector<1x16x16xf32> to vector<16x16xf32>
    %226 = vector.shape_cast %223 : vector<16x16xf32> to vector<1x16x16xf32>
    tpu.vector_store %arg11[%c0_127, %c0_128, %c0_129], %226 {strides = array<i32>} : memref<1x16x16xf32, #tpu.memory_space<vmem>>, vector<1x16x16xf32>,
    return
  }
  func.func @transform_0(%arg0: i32, %arg1: i32) -> (i32, i32, i32) {
    %c0_i32 = arith.constant 0 : i32
    %c0_i32_0 = arith.constant 0 : i32
    return %arg0, %c0_i32, %arg1 : i32, i32, i32
  }
  func.func @transform_1(%arg0: i32, %arg1: i32) -> (i32, i32, i32, i32) {
    %c0_i32 = arith.constant 0 : i32
    %c0_i32_0 = arith.constant 0 : i32
    %c0_i32_1 = arith.constant 0 : i32
    return %arg0, %c0_i32, %c0_i32_0, %arg1 : i32, i32, i32, i32
  }
  func.func @transform_2(%arg0: i32, %arg1: i32) -> (i32, i32, i32, i32) {
    %c0_i32 = arith.constant 0 : i32
    %c0_i32_0 = arith.constant 0 : i32
    %c0_i32_1 = arith.constant 0 : i32
    return %arg0, %c0_i32, %c0_i32_0, %arg1 : i32, i32, i32, i32
  }
  func.func @transform_3(%arg0: i32, %arg1: i32) -> (i32, i32) {
    %c0_i32 = arith.constant 0 : i32
    %c0_i32_0 = arith.constant 0 : i32
    %c0_i32_1 = arith.constant 0 : i32
    return %c0_i32, %c0_i32_0 : i32, i32
  }
  func.func @transform_4(%arg0: i32, %arg1: i32) -> (i32, i32) {
    %c0_i32 = arith.constant 0 : i32
    %c0_i32_0 = arith.constant 0 : i32
    %c0_i32_1 = arith.constant 0 : i32
    return %c0_i32, %c0_i32_0 : i32, i32
  }
  func.func @transform_5(%arg0: i32, %arg1: i32) -> (i32, i32) {
    %c0_i32 = arith.constant 0 : i32
    %c0_i32_0 = arith.constant 0 : i32
    %c0_i32_1 = arith.constant 0 : i32
    return %c0_i32, %c0_i32_0 : i32, i32
  }
  func.func @transform_6(%arg0: i32, %arg1: i32) -> (i32, i32) {
    %c0_i32 = arith.constant 0 : i32
    %c0_i32_0 = arith.constant 0 : i32
    %c0_i32_1 = arith.constant 0 : i32
    return %c0_i32, %c0_i32_0 : i32, i32
  }
  func.func @transform_7(%arg0: i32, %arg1: i32) -> (i32, i32) {
    %c0_i32 = arith.constant 0 : i32
    %c0_i32_0 = arith.constant 0 : i32
    %c0_i32_1 = arith.constant 0 : i32
    return %c0_i32, %c0_i32_0 : i32, i32
  }
  func.func @transform_8(%arg0: i32, %arg1: i32) -> (i32, i32) {
    %c0_i32 = arith.constant 0 : i32
    %c0_i32_0 = arith.constant 0 : i32
    %c0_i32_1 = arith.constant 0 : i32
    return %c0_i32, %c0_i32_0 : i32, i32
  }
  func.func @transform_9(%arg0: i32, %arg1: i32) -> (i32, i32, i32) {
    %c0_i32 = arith.constant 0 : i32
    %c0_i32_0 = arith.constant 0 : i32
    return %arg0, %c0_i32, %arg1 : i32, i32, i32
  }
}

</mosaic_0001>

<bundles_post_ra>
// kernel: tpu_custom_call.1
= control target key start
LH: loop header
LB: loop body
LE: loop exit
PB: predicated region body
PF: predicated region fallthrough
CT: control target
= control target key end

     0   :  { %s4110_s0 = inlined_call_operand.vmem [shape: bf16[2,8,16], index: 0, kind: input, shape index: {}]   ;;  %s4111_s1 = inlined_call_operand.hbm [shape: bf16[2,8,8,16], index: 1, kind: input, shape index: {}]   ;;  %s4112_s2 = inlined_call_operand.hbm [shape: bf16[2,8,8,16], index: 2, kind: input, shape index: {}]   ;;  %s4113_s3 = inlined_call_operand.vmem [shape: bf16[16,8], index: 3, kind: input, shape index: {}]   ;;  %s4114_s4 = inlined_call_operand.vmem [shape: bf16[32,8], index: 4, kind: input, shape index: {}]   ;;  %s4115_s5 = inlined_call_operand.vmem [shape: bf16[16,8], index: 5, kind: input, shape index: {}]   ;;  %s4116_s6 = inlined_call_operand.vmem [shape: bf16[16,16], index: 6, kind: input, shape index: {}]   ;;  %s4117_s7 = inlined_call_operand.vmem [shape: bf16[16,16], index: 7, kind: input, shape index: {}]   ;;  %s4118_s8 = inlined_call_operand.vmem [shape: bf16[16,16], index: 8, kind: input, shape index: {}]   ;;  %s4119_s9 = inlined_call_operand.hbm [shape: f32[2,16,16], index: 9, kind: output, shape index: {}]  }
   0x1   :  { %4128 = sst [smem:[#allocation15_spill]] %s4111_s1 }
   0x2   :  { %14 = vsyncpa [#allocation3], 0 }
   0x3   :  { %16 = vsyncpa [#allocation3 + $0x1], 0 }
   0x4   :  { %17 = vsyncpa [#allocation6], 0 }
   0x5   :  { %19 = vsyncpa [#allocation6 + $0x1], 0 }
   0x6   :  { %20 = vsyncpa [#allocation4], 0 }
   0x7   :  { %22 = vsyncpa [#allocation4 + $0x1], 0  ;;  %s3456_s30 = smov 0   ;;  %s3458_s10 = smov 0  }
   0x8   :  { %s3460_s11 = smov 0   ;;  %s3462_s12 = smov 0  }
   0x9   :  { %s3464_s13 = smov 0   ;;  %s3466_s14 = smov 0  }
   0xa LB: > { %4129 = sst [smem:[#allocation11_spill]] %s3383_s11  ;;  %s2696_s15 = sadd.s32 4294967295, %s3395_s14   ;;  %s3395_s14 = sphi %s3466_s14, %s28_s14   ;;  %s3391_s13 = sphi %s3464_s13, %s4156_s13   ;;  %s3387_s12 = sphi %s3462_s12, %s4155_s12   ;;  %s3383_s11 = sphi %s3460_s11, %s4151_s11   ;;  %s3379_s10 = sphi %s3458_s10, %s4154_s10   ;;  %s3375_s30 = sphi %s3456_s30, %s4153_s30  }
   0xb   : > { %s2697_s16 = sadd.s32 4294967294, %s3395_s14   ;;  %s40_s17 = sadd.s32 1, %s3391_s13 }
   0xc   : > { %s77_s18 = sadd.s32 1, %s3383_s11  ;;  %p42_p0 = scmp.ge.s32.totalorder %s40_s17, 2 }
   0xd   : > { %p84_p1 = scmp.ne.s32.totalorder %s3383_s11, %s3379_s10  ;;  %p85_p2 = scmp.eq.s32.totalorder %s3395_s14, 0 }
   0xe   : > { %p90_p3 = scmp.ne.s32.totalorder %s3379_s10, %s3375_s30  ;;  %s4158_s17 = smov (%p42_p0, %s40_s17), 0 }
   0xf   : > { %4130 = sst [smem:[#allocation12_spill]] %s4158_s17  ;;  %p3497_p4 = por %p85_p2, %p84_p1 }
  0x10   : > { %p91_p5 = scmp.eq.s32.totalorder %s2696_s15, 0  ;;  %s72_s20 = ssub.s32 %s3391_s13, %s4158_s17 }
  0x11   : > { %p270_p6 = scmp.eq.s32.totalorder %s2696_s15, 1  ;;  %p75_p7 = scmp.eq.s32.totalorder %s72_s20, 0 }
  0x12   : > { %p3503_p8 = por %p91_p5, %p90_p3  ;;  %p276_p10 = scmp.eq.s32.totalorder %s2697_s16, 1 }
  0x13   : > { %p3507_p9 = por %p270_p6, %p84_p1  ;;  %p3150_p13 = scmp.lt.s32.totalorder %s3395_s14, 2 }
  0x14   : > { %s4132_s21 = scalar_select %p3503_p8, 1, 0 }
  0x15   : > { %s4133_s22 = scalar_select %p3507_p9, 1, 0 }
  0x16   : > { %s3512_s23 = scalar_select %p75_p7, %s3383_s11, %s77_s18  }
  0x17   : > { %p3514_p11 = por %p276_p10, %p90_p3  ;;  %s3521_s25 = sand.u32 1, %s3383_s11  }
  0x18   : > { %4134 = sst [smem:[#allocation13_spill]] %s3512_s23  ;;  %s4120_s26 = sshll.u32 %s3521_s25, 5 }
  0x19   : > { %s4135_s24 = scalar_select %p3514_p11, 1, 0 }
  0x1a   : > { %s4121_s27 = sshll.u32 %s3391_s13, 9  ;;  %s4137_s1 = sld [smem:[#allocation15_spill]] }
  0x1b   : > { %4136 = sst [smem:[#allocation14_spill]] %s4135_s24  ;;  %s328_s16 = scalar_lea.vmem [#allocation2], %s4120_s26 }
  0x1c   : > { %s336_s18 = sshll.u32 %s328_s16, 4  ;;  %p3538_p0 = pnand %p3150_p13, %p3497_p4  ;;  %s3534_s18 = int_to_ptr.vmem [resolvable:$true] %s336_s18 }
  0x1e   : > { %p3251_p3 = pneg %p3538_p0 }
  0x20   : > { %s3530_s15 = scalar_lea.hbm %s4137_s1, %s4121_s27  ;;  %s3254_s19 = scalar_lea.hbm %s4137_s1, 1024 }
  0x21   : > { %s3249_s29 = scalar_lea.hbm %s3530_s15, 512  ;;  %p3255_p4 = scmp.lt.u32.totalorder %s3530_s15, %s4137_s1 }
  0x22   : > { %p3250_p2 = scmp.ne.s32.totalorder %s3530_s15, %s3249_s29  ;;  %p3256_p7 = scmp.lt.u32.totalorder %s3254_s19, %s3249_s29 }
  0x23   : > { %p3258_p13 = scmp.lt.u32.totalorder %s3249_s29, %s3530_s15 }
  0x24   : > { %p3252_p5 = pnand %p3251_p3, %p3250_p2  ;;  %p3257_p10 = por %p3256_p7, %p3255_p4 }
  0x26   : > { %p3253_p6 = pneg %p3252_p5  ;;  %p3259_p12 = por %p3258_p13, %p3257_p10 }
  0x28   : > { %p3260_p1 = pnand %p3259_p12, %p3253_p6 }
  0x2a   : > { %3263 = shalt.err (!%p3260_p1)
}
  0x2b   : > { %s3264_s28 = scalar_lea.vmem %s3534_s18, 512  ;;  %s3397_s26 = smov [#allocation2]  }
  0x2c   : > { %p3265_p2 = scmp.ne.s32.totalorder %s3534_s18, %s3264_s28  ;;  %s3269_s16 = sshll.u32 %s3397_s26, 4  ;;  %s3270_s16 = int_to_ptr.vmem [resolvable:$false] %s3269_s16 }
  0x2d   : > { %s3271_s17 = scalar_lea.vmem %s3270_s16, 1024  ;;  %p3272_p9 = scmp.lt.s32.totalorder %s3534_s18, %s3270_s16 }
  0x2e   : > { %p3267_p5 = pnand %p3265_p2, %p3251_p3  ;;  %p3273_p4 = scmp.lt.s32.totalorder %s3271_s17, %s3264_s28 }
  0x30   : > { %p3268_p11 = pneg %p3267_p5  ;;  %p3274_p7 = por %p3273_p4, %p3272_p9 }
  0x32   : > { %p3275_p10 = pnand %p3274_p7, %p3268_p11 }
  0x34   : > { %3278 = shalt.err (!%p3275_p10)
}
  0x35   : > { %s4126_s27 = smov 64   ;;  %s3399_s29 = smov 4  }
  0x36   : > { %s4139_s28 = scalar_lea.sflag [#allocation3], %s3521_s25  ;;  %p366_p9 = scmp.lt.s32.totalorder %s3395_s14, 3 }
  0x37   : > { %3142 = dma.hbm_to_vmem [thread:$0]  (!%p3538_p0), %s3530_s15, 512, %s3534_s18, %s4139_s28, %s4126_s27, %s4126_s27, %s3399_s29  }
  0x38   : > { %s4140_s19 = sshll.u32 %s3391_s13, 9  ;;  %p4141_p11 = scmp.ge.s32.totalorder %s3395_s14, 1 }
  0x39   : > { %s3580_s17 = scalar_lea.hbm %s4112_s2, %s4140_s19  ;;  %s4143_s23 = sshll.u32 %s3521_s25, 5 }
  0x3a   : > { %p3584_p12 = pnand %p4141_p11, %p366_p9  ;;  %s350_s11 = scalar_lea.vmem [#allocation5], %s4143_s23 }
  0x3b   : > { %s358_s24 = sshll.u32 %s350_s11, 4  ;;  %s347_s15 = scalar_lea.sflag [#allocation6], %s3521_s25  ;;  %s3590_s24 = int_to_ptr.vmem [resolvable:$true] %s358_s24 }
  0x3c   : > { %s3279_s18 = scalar_lea.hbm %s3580_s17, 512  ;;  %s3284_s26 = scalar_lea.hbm %s4112_s2, 1024 }
  0x3d   : > { %p3280_p1 = scmp.ne.s32.totalorder %s3580_s17, %s3279_s18  ;;  %p3285_p2 = scmp.lt.u32.totalorder %s3580_s17, %s4112_s2 }
  0x3e   : > { %p3286_p5 = scmp.lt.u32.totalorder %s3284_s26, %s3279_s18  ;;  %p3288_p7 = scmp.lt.u32.totalorder %s3279_s18, %s3580_s17 }
  0x3f   : > { %p3282_p6 = pnand %p3280_p1, %p3251_p3 }
  0x40   : > { %p3287_p4 = por %p3286_p5, %p3285_p2 }
  0x41   : > { %p3283_p13 = pneg %p3282_p6 }
  0x42   : > { %p3289_p10 = por %p3288_p7, %p3287_p4 }
  0x44   : > { %p3290_p9 = pnand %p3289_p10, %p3283_p13 }
  0x46   : > { %3293 = shalt.err (!%p3290_p9)
}
  0x47   : > { %s3294_s11 = scalar_lea.vmem %s3590_s24, 512  ;;  %s3400_s23 = smov [#allocation5]  }
  0x48   : > { %p3295_p11 = scmp.ne.s32.totalorder %s3590_s24, %s3294_s11  ;;  %s3299_s28 = sshll.u32 %s3400_s23, 4  ;;  %s3300_s28 = int_to_ptr.vmem [resolvable:$false] %s3299_s28 }
  0x49   : > { %s3301_s27 = scalar_lea.vmem %s3300_s28, 1024  ;;  %p3302_p8 = scmp.lt.s32.totalorder %s3590_s24, %s3300_s28 }
  0x4a   : > { %p3297_p1 = pnand %p3295_p11, %p3251_p3  ;;  %p3303_p2 = scmp.lt.s32.totalorder %s3301_s27, %s3294_s11 }
  0x4c   : > { %p3298_p6 = pneg %p3297_p1  ;;  %p3304_p5 = por %p3303_p2, %p3302_p8 }
  0x4e   : > { %p3305_p4 = pnand %p3304_p5, %p3298_p6 }
  0x50   : > { %3308 = shalt.err (!%p3305_p4)
}
  0x51   : > { %s4144_s18 = smov 64   ;;  %370 = sbr.rel (%p3584_p12) target bundleno = 5750 (0x1676), region = 56 }
  0x52   : > { %3145 = dma.hbm_to_vmem [thread:$0]  (!%p3538_p0), %s3580_s17, 512, %s3590_s24, %s347_s15, %s4144_s18, %s4144_s18, %s3399_s29  }
  0x53   : > { %s3624_s19 = sand.u32 (!%p3584_p12), 1, %s3379_s10   ;;  %p4145_p8 = scmp.ne.s32.totalorder (!%p3584_p12), %s4132_s21, 0 }
  0x54   : > { %s2707_s26 = sshll.u32 (!%p3584_p12), %s3624_s19, 5  ;;  %s373_s16 = scalar_lea.sflag (!%p3584_p12), [#allocation3], %s3624_s19 }
  0x55   : > { %s3628_s20 = scalar_lea.vmem (!%p3584_p12), [#allocation2], %s2707_s26 }
  0x58   : > { %3362 = dma.done.wait (%p4145_p8), %s373_s16, 512  }
  0x59   : > { %3364 = vsyncadd (%p4145_p8), %s373_s16, 4294966784  ;;  %s382_s24 = scalar_lea.sflag [#allocation6], %s3624_s19  ;;  %s3635_s1 = scalar_lea.vmem [#allocation5], %s2707_s26 }
  0x5a   : > { %3366 = dma.done.wait (%p4145_p8), %s382_s24, 512  }
  0x5b   : > { %3368 = vsyncadd (%p4145_p8), %s382_s24, 4294966784  ;;  %p432_p0 = scmp.lt.s32.totalorder %s3387_s12, 1  ;;  %v3401_v0 = vmov 0.0   ;;  %vm3402_vm0 = vmmov 0   ;;  %vm464_vm1 = vcmask 1043456   ;;  %vm460_vm2 = vcmask 64512  }
  0x5c   : > { %2879 = vmatprep.subr.bf16.mxu0 %v3401_v0  ;;  %2881 = vmatprep.mubr.msk.bf16.mxu0 %vm3402_vm0, %v3401_v0  ;;  %v509_v1 = vld [vmem:[%s3628_s20] sm:$0xf]  ;;  %v3666_v7 = vld [vmem:[%s4114_s4 + $0x8] sm:$0xff]   ;;  %vm639_vm3 = vcmask 130048   ;;  %v2725_v38 = vld [vmem:[%s3628_s20 + $0x4] sm:$0xf] }
  0x5d   : > { %s433_s25 = scalar_select %p432_p0, %s3387_s12, 1  ;;  %3125 = vmatprep.subr.msk.bf16.mxu1 %vm464_vm1, %v509_v1  ;;  %v528_v4 = vsel %vm464_vm1, %v509_v1, 0  ;;  %v3656_v5 = vld [vmem:[%s4114_s4] sm:$0xff]   ;;  %v797_v40 = vsel %vm464_vm1, %v2725_v38, 0 }
  0x5e   : > { %v3207_v6 = vld [vmem:[%s4113_s3] sm:$0xff]   ;;  %2886 = vmatpush3.bf16.msra.mxu1 %v528_v4  ;;  %2887 = vmatprep.mubr.msk.bf16.mxu1 %vm460_vm2, %v3656_v5  ;;  %s2788_s23 = sshll.u32 %s3387_s12, 8  ;;  %s2557_s16 = scalar_lea.sflag [#allocation4], %s3624_s19 }
  0x5f   : > { %s2710_s29 = sshll.u32 %s433_s25, 2  ;;  %v510_v8 = vld [vmem:[%s3635_s1] sm:$0xf]  ;;  %2897 = vmatprep.subr.bf16.mxu1 %v3401_v0  ;;  %v2726_v48 = vld [vmem:[%s3635_s1 + $0x4] sm:$0xf]  ;;  %s4058_s26 = scalar_lea.hbm %s4119_s9, %s2788_s23 }
  0x60   : > { %s438_s21 = scalar_lea.vmem %s4110_s0, %s2710_s29  ;;  %v588_v9 = vsel %vm464_vm1, %v510_v8, 0  ;;  %v3683_v10 = vld [vmem:[%s4115_s5] sm:$0xff]   ;;  %v849_v51 = vsel %vm464_vm1, %v2726_v48, 0  ;;  %p4146_p12 = scmp.ne.s32.totalorder %s4133_s22, 0 }
  0x61   : > { %v454_v2 = vld [vmem:[%s438_s21] sm:$0xf]  ;;  %2888 = vmatmul.mubr.msk.bf16.vlgmr.msra.gmra.mrb[0].mxu1 %vm460_vm2, %v3666_v7  ;;  %s3403_s12 = smov [#allocation7]  }
  0x62   : > { %v466_v3 = vsel %vm464_vm1, %v454_v2, 0  ;;  %2899 = vmatprep.mubr.msk.bf16.mxu1 %vm3402_vm0, %v3401_v0  ;;  %v3698_v28 = vld [vmem:[%s4116_s6] sm:$0xff]   ;;  %s3313_s25 = sshll.u32 %s3403_s12, 4  ;;  %s3314_s25 = int_to_ptr.vmem [resolvable:$false] %s3313_s25 }
  0x63   : > { %2880 = vmatpush3.bf16.msra.mxu0 %v466_v3  ;;  %v3713_v39 = vld [vmem:[%s4117_s7] sm:$0xff]   ;;  %s3315_s29 = scalar_lea.vmem %s3314_s25, 512 }
  0x64   : > { %2891 = vmatprep.subr.bf16.mxu0 %v3401_v0  ;;  %v3730_v49 = vld [vmem:[%s4118_s8] sm:$0xff]  }
  0x66   : > { %2882 = vmatmul.mubr.msk.bf16.vlgmr.msra.gmra.mrb[0].mxu0 %vm460_vm2, %v3207_v6 }
  0x67   : > { %2892 = vmatpush3.bf16.msra.mxu0 %v588_v9  ;;  %2893 = vmatprep.mubr.msk.bf16.mxu0 %vm3402_vm0, %v3401_v0 }
  0x68   : > { %2903 = vmatprep.subr.bf16.mxu0 %v3401_v0 }
  0x6e   : > { %2894 = vmatmul.mubr.msk.bf16.vlgmr.msra.gmra.mrb[4].mxu0 %vm460_vm2, %v3683_v10 }
  0x6f   : > { %2905 = vmatprep.mubr.msk.bf16.mxu0 %vm3402_vm0, %v3401_v0 }
 0x134   : > { %v2889_v12 = vpop.f32.mrb[0].mxu1 }
 0x135   : > { %v564_v14 = vpop.f32.mrb[1].mxu1 }
 0x136   : > { %v2890_v17 = vpop.f32.mrb[2].mxu1 }
 0x137   : > { %v567_v19 = vpop.f32.mrb[3].mxu1 }
 0x139   : > { %v3689_v11 = vpop.f32.mrb[0].mxu0 }
 0x13a   : > { %v2883_v13 = vpop.f32.mrb[1].mxu0  ;;  %v684_v15 = vsub.f32 %v3689_v11, %v564_v14 }
 0x13b   : > { %v3692_v16 = vpop.f32.mrb[2].mxu0 }
 0x13c   : > { %v2884_v18 = vpop.f32.mrb[3].mxu0  ;;  %v685_v20 = vsub.f32 %v3692_v16, %v567_v19  ;;  %v2733_v19 = vld [vmem:[%s3628_s20 + $0x8] sm:$0xf] }
 0x141   : > { %v624_v21 = vpop.f32.mrb[4].mxu0 }
 0x142   : > { %v2895_v22 = vpop.f32.mrb[5].mxu0  ;;  %v631_v24 = vmax.f32 %v624_v21, 0.0 }
 0x143   : > { %v627_v23 = vpop.f32.mrb[6].mxu0 }
 0x144   : > { %v632_v25 = vmax.f32 %v627_v23, 0.0  ;;  %v2896_v26 = vpop.f32.mrb[7].mxu0 }
 0x146   : > { %v633_v27 = vpack.c.bf16 %v632_v25, %v631_v24 }
 0x148   : > { %2898 = vmatpush3.bf16.msra.mxu1 %v633_v27 }
 0x149   : > { %2909 = vmatprep.subr.bf16.mxu1 %v3401_v0 }
 0x14b   : > { %2900 = vmatmul.mubr.msk.bf16.vlgmr.msra.gmra.mrb[4].mxu1 %vm639_vm3, %v3698_v28 }
 0x14c   : > { %2911 = vmatprep.mubr.msk.bf16.mxu1 %vm3402_vm0, %v3401_v0 }
 0x21e   : > { %v677_v29 = vpop.f32.mrb[4].mxu1 }
 0x21f   : > { %v686_v30 = vadd.f32 %v684_v15, %v677_v29  ;;  %v3705_v31 = vadd.f32 %v2889_v12, %v677_v29  ;;  %v2901_v32 = vpop.f32.mrb[5].mxu1  ;;  %v2734_v29 = vld [vmem:[%s3635_s1 + $0x8] sm:$0xf] }
 0x220   : > { %v680_v33 = vpop.f32.mrb[6].mxu1  ;;  %v1085_v32 = vsel %vm464_vm1, %v2734_v29, 0 }
 0x221   : > { %v687_v34 = vadd.f32 %v685_v20, %v680_v33  ;;  %v3707_v35 = vadd.f32 %v2890_v17, %v680_v33  ;;  %v2902_v36 = vpop.f32.mrb[7].mxu1  ;;  %v1033_v20 = vsel %vm464_vm1, %v2733_v19, 0 }
 0x223   : > { %v688_v37 = vpack.c.bf16 %v687_v34, %v686_v30 }
 0x225   : > { %2904 = vmatpush3.bf16.msra.mxu0 %v688_v37 }
 0x226   : > { %3126 = vmatprep.subr.msk.bf16.mxu0 %vm464_vm1, %v2725_v38 }
 0x228   : > { %2906 = vmatmul.mubr.msk.bf16.vlgmr.msra.gmra.mrb[8].mxu0 %vm639_vm3, %v3713_v39 }
 0x229   : > { %2916 = vmatpush3.bf16.msra.mxu0 %v797_v40  ;;  %2917 = vmatprep.mubr.msk.bf16.mxu0 %vm460_vm2, %v3656_v5 }
 0x22a   : > { %2927 = vmatprep.subr.bf16.mxu0 %v3401_v0 }
 0x230   : > { %2918 = vmatmul.mubr.msk.bf16.vlgmr.msra.gmra.mrb[12].mxu0 %vm460_vm2, %v3666_v7 }
 0x231   : > { %2929 = vmatprep.mubr.msk.bf16.mxu0 %vm3402_vm0, %v3401_v0 }
 0x2fb   : > { %v731_v41 = vpop.f32.mrb[8].mxu0 }
 0x2fc   : > { %v2907_v42 = vpop.f32.mrb[9].mxu0  ;;  %v738_v44 = vmax.f32 %v731_v41, 0.0 }
 0x2fd   : > { %v734_v43 = vpop.f32.mrb[10].mxu0 }
 0x2fe   : > { %v739_v45 = vmax.f32 %v734_v43, 0.0  ;;  %v2908_v46 = vpop.f32.mrb[11].mxu0 }
 0x300   : > { %v740_v47 = vpack.c.bf16 %v739_v45, %v738_v44 }
 0x302   : > { %2910 = vmatpush3.bf16.msra.mxu1 %v740_v47 }
 0x303   : > { %v2919_v50 = vpop.f32.mrb[12].mxu0  ;;  %2921 = vmatprep.subr.bf16.mxu1 %v3401_v0 }
 0x304   : > { %v833_v52 = vpop.f32.mrb[13].mxu0 }
 0x305   : > { %v936_v53 = vsub.f32 %v3689_v11, %v833_v52  ;;  %2912 = vmatmul.mubr.msk.bf16.vlgmr.msra.gmra.mrb[8].mxu1 %vm639_vm3, %v3730_v49  ;;  %v2920_v54 = vpop.f32.mrb[14].mxu0 }
 0x306   : > { %v836_v55 = vpop.f32.mrb[15].mxu0  ;;  %2922 = vmatpush3.bf16.msra.mxu1 %v849_v51  ;;  %2923 = vmatprep.mubr.msk.bf16.mxu1 %vm3402_vm0, %v3401_v0 }
 0x307   : > { %v937_v56 = vsub.f32 %v3692_v16, %v836_v55  ;;  %2933 = vmatprep.subr.bf16.mxu1 %v3401_v0 }
 0x30d   : > { %2924 = vmatmul.mubr.msk.bf16.vlgmr.msra.gmra.mrb[12].mxu1 %vm460_vm2, %v3683_v10 }
 0x30e   : > { %2935 = vmatprep.mubr.msk.bf16.mxu1 %vm3402_vm0, %v3401_v0 }
 0x3d8   : > { %v3745_v57 = vpop.f32.mrb[8].mxu1 }
 0x3d9   : > { %v2913_v58 = vpop.f32.mrb[9].mxu1 }
 0x3da   : > { %v3747_v59 = vpop.f32.mrb[10].mxu1 }
 0x3db   : > { %v2914_v60 = vpop.f32.mrb[11].mxu1 }
 0x3e0   : > { %v885_v61 = vpop.f32.mrb[12].mxu1 }
 0x3e1   : > { %v2925_v62 = vpop.f32.mrb[13].mxu1  ;;  %v892_v1 = vmax.f32 %v885_v61, 0.0 }
 0x3e2   : > { %v888_v63 = vpop.f32.mrb[14].mxu1 }
 0x3e3   : > { %v893_v2 = vmax.f32 %v888_v63, 0.0  ;;  %v2926_v3 = vpop.f32.mrb[15].mxu1 }
 0x3e5   : > { %v894_v4 = vpack.c.bf16 %v893_v2, %v892_v1  ;;  %v2741_v2 = vld [vmem:[%s3628_s20 + $0xc] sm:$0xf] }
 0x3e6   : > { %v1269_v3 = vsel %vm464_vm1, %v2741_v2, 0 }
 0x3e7   : > { %2928 = vmatpush3.bf16.msra.mxu0 %v894_v4 }
 0x3e8   : > { %2939 = vmatprep.subr.bf16.mxu0 %v3401_v0 }
 0x3ea   : > { %2930 = vmatmul.mubr.msk.bf16.vlgmr.msra.gmra.mrb[16].mxu0 %vm639_vm3, %v3698_v28 }
 0x3eb   : > { %2941 = vmatprep.mubr.msk.bf16.mxu0 %vm3402_vm0, %v3401_v0 }
 0x4bd   : > { %v929_v6 = vpop.f32.mrb[16].mxu0 }
 0x4be   : > { %v938_v8 = vadd.f32 %v936_v53, %v929_v6  ;;  %v3754_v9 = vadd.f32 %v2919_v50, %v929_v6  ;;  %v2931_v12 = vpop.f32.mrb[17].mxu0 }
 0x4bf   : > { %v932_v13 = vpop.f32.mrb[18].mxu0 }
 0x4c0   : > { %v939_v14 = vadd.f32 %v937_v56, %v932_v13  ;;  %v3756_v15 = vadd.f32 %v2920_v54, %v932_v13  ;;  %v2932_v17 = vpop.f32.mrb[19].mxu0 }
 0x4c2   : > { %v940_v18 = vpack.c.bf16 %v939_v14, %v938_v8 }
 0x4c4   : > { %2934 = vmatpush3.bf16.msra.mxu1 %v940_v18  ;;  %v2742_v18 = vld [vmem:[%s3635_s1 + $0xc] sm:$0xf] }
 0x4c5   : > { %3127 = vmatprep.subr.msk.bf16.mxu1 %vm464_vm1, %v2733_v19 }
 0x4c7   : > { %2936 = vmatmul.mubr.msk.bf16.vlgmr.msra.gmra.mrb[16].mxu1 %vm639_vm3, %v3713_v39 }
 0x4c8   : > { %2946 = vmatpush3.bf16.msra.mxu1 %v1033_v20  ;;  %2947 = vmatprep.mubr.msk.bf16.mxu1 %vm460_vm2, %v3656_v5  ;;  %v1321_v20 = vsel %vm464_vm1, %v2742_v18, 0 }
 0x4c9   : > { %2957 = vmatprep.subr.bf16.mxu1 %v3401_v0 }
 0x4cf   : > { %2948 = vmatmul.mubr.msk.bf16.vlgmr.msra.gmra.mrb[20].mxu1 %vm460_vm2, %v3666_v7 }
 0x4d0   : > { %2959 = vmatprep.mubr.msk.bf16.mxu1 %vm3402_vm0, %v3401_v0 }
 0x59a   : > { %v975_v21 = vpop.f32.mrb[16].mxu1 }
 0x59b   : > { %v2937_v22 = vpop.f32.mrb[17].mxu1  ;;  %v982_v24 = vmax.f32 %v975_v21, 0.0 }
 0x59c   : > { %v978_v23 = vpop.f32.mrb[18].mxu1 }
 0x59d   : > { %v983_v25 = vmax.f32 %v978_v23, 0.0  ;;  %v2938_v26 = vpop.f32.mrb[19].mxu1 }
 0x59f   : > { %v984_v27 = vpack.c.bf16 %v983_v25, %v982_v24 }
 0x5a1   : > { %2940 = vmatpush3.bf16.msra.mxu0 %v984_v27 }
 0x5a2   : > { %v2949_v30 = vpop.f32.mrb[20].mxu1  ;;  %2951 = vmatprep.subr.bf16.mxu0 %v3401_v0 }
 0x5a3   : > { %v1069_v33 = vpop.f32.mrb[21].mxu1 }
 0x5a4   : > { %v1172_v34 = vsub.f32 %v3689_v11, %v1069_v33  ;;  %2942 = vmatmul.mubr.msk.bf16.vlgmr.msra.gmra.mrb[20].mxu0 %vm639_vm3, %v3730_v49  ;;  %v2950_v36 = vpop.f32.mrb[22].mxu1 }
 0x5a5   : > { %v1072_v37 = vpop.f32.mrb[23].mxu1  ;;  %2952 = vmatpush3.bf16.msra.mxu0 %v1085_v32  ;;  %2953 = vmatprep.mubr.msk.bf16.mxu0 %vm3402_vm0, %v3401_v0 }
 0x5a6   : > { %v1173_v38 = vsub.f32 %v3692_v16, %v1072_v37  ;;  %2963 = vmatprep.subr.bf16.mxu0 %v3401_v0 }
 0x5ac   : > { %2954 = vmatmul.mubr.msk.bf16.vlgmr.msra.gmra.mrb[24].mxu0 %vm460_vm2, %v3683_v10 }
 0x5ad   : > { %2965 = vmatprep.mubr.msk.bf16.mxu0 %vm3402_vm0, %v3401_v0 }
 0x677   : > { %v3784_v40 = vpop.f32.mrb[20].mxu0 }
 0x678   : > { %v2444_v41 = vmax.f32 %v3745_v57, %v3784_v40  ;;  %v2943_v42 = vpop.f32.mrb[21].mxu0 }
 0x679   : > { %v3788_v43 = vpop.f32.mrb[22].mxu0 }
 0x67a   : > { %v2445_v44 = vmax.f32 %v3747_v59, %v3788_v43  ;;  %v2944_v45 = vpop.f32.mrb[23].mxu0 }
 0x67f   : > { %v1121_v46 = vpop.f32.mrb[24].mxu0 }
 0x680   : > { %v2955_v47 = vpop.f32.mrb[25].mxu0  ;;  %v1128_v50 = vmax.f32 %v1121_v46, 0.0 }
 0x681   : > { %v1124_v48 = vpop.f32.mrb[26].mxu0 }
 0x682   : > { %v1129_v51 = vmax.f32 %v1124_v48, 0.0  ;;  %v2956_v52 = vpop.f32.mrb[27].mxu0 }
 0x684   : > { %v1130_v53 = vpack.c.bf16 %v1129_v51, %v1128_v50 }
 0x686   : > { %2958 = vmatpush3.bf16.msra.mxu1 %v1130_v53 }
 0x687   : > { %2969 = vmatprep.subr.bf16.mxu1 %v3401_v0 }
 0x689   : > { %2960 = vmatmul.mubr.msk.bf16.vlgmr.msra.gmra.mrb[24].mxu1 %vm639_vm3, %v3698_v28 }
 0x68a   : > { %2971 = vmatprep.mubr.msk.bf16.mxu1 %vm3402_vm0, %v3401_v0 }
 0x75c   : > { %v1165_v54 = vpop.f32.mrb[24].mxu1 }
 0x75d   : > { %v1174_v55 = vadd.f32 %v1172_v34, %v1165_v54  ;;  %v3797_v56 = vadd.f32 %v2949_v30, %v1165_v54  ;;  %v2961_v58 = vpop.f32.mrb[25].mxu1 }
 0x75e   : > { %v1168_v60 = vpop.f32.mrb[26].mxu1 }
 0x75f   : > { %v1175_v61 = vadd.f32 %v1173_v38, %v1168_v60  ;;  %v3799_v62 = vadd.f32 %v2950_v36, %v1168_v60  ;;  %v2962_v63 = vpop.f32.mrb[27].mxu1 }
 0x761   : > { %v1176_v1 = vpack.c.bf16 %v1175_v61, %v1174_v55  ;;  %v2749_v55 = vld [vmem:[%s3628_s20 + $0x10] sm:$0xf] }
 0x762   : > { %v1505_v58 = vsel %vm464_vm1, %v2749_v55, 0 }
 0x763   : > { %2964 = vmatpush3.bf16.msra.mxu0 %v1176_v1 }
 0x764   : > { %3128 = vmatprep.subr.msk.bf16.mxu0 %vm464_vm1, %v2741_v2 }
 0x766   : > { %2966 = vmatmul.mubr.msk.bf16.vlgmr.msra.gmra.mrb[28].mxu0 %vm639_vm3, %v3713_v39 }
 0x767   : > { %2976 = vmatpush3.bf16.msra.mxu0 %v1269_v3  ;;  %2977 = vmatprep.mubr.msk.bf16.mxu0 %vm460_vm2, %v3656_v5 }
 0x768   : > { %2987 = vmatprep.subr.bf16.mxu0 %v3401_v0 }
 0x76e   : > { %2978 = vmatmul.mubr.msk.bf16.vlgmr.msra.gmra.mrb[32].mxu0 %vm460_vm2, %v3666_v7 }
 0x76f   : > { %2989 = vmatprep.mubr.msk.bf16.mxu0 %vm3402_vm0, %v3401_v0 }
 0x839   : > { %v1211_v4 = vpop.f32.mrb[28].mxu0 }
 0x83a   : > { %v2967_v6 = vpop.f32.mrb[29].mxu0  ;;  %v1218_v12 = vmax.f32 %v1211_v4, 0.0 }
 0x83b   : > { %v1214_v8 = vpop.f32.mrb[30].mxu0  ;;  %v2750_v6 = vld [vmem:[%s3635_s1 + $0x10] sm:$0xf] }
 0x83c   : > { %v1219_v13 = vmax.f32 %v1214_v8, 0.0  ;;  %v2968_v14 = vpop.f32.mrb[31].mxu0 }
 0x83e   : > { %v1220_v17 = vpack.c.bf16 %v1219_v13, %v1218_v12  ;;  %v1557_v12 = vsel %vm464_vm1, %v2750_v6, 0 }
 0x840   : > { %2970 = vmatpush3.bf16.msra.mxu1 %v1220_v17 }
 0x841   : > { %v2979_v19 = vpop.f32.mrb[32].mxu0  ;;  %2981 = vmatprep.subr.bf16.mxu1 %v3401_v0 }
 0x842   : > { %v1305_v21 = vpop.f32.mrb[33].mxu0 }
 0x843   : > { %v1408_v22 = vsub.f32 %v3689_v11, %v1305_v21  ;;  %2972 = vmatmul.mubr.msk.bf16.vlgmr.msra.gmra.mrb[28].mxu1 %vm639_vm3, %v3730_v49  ;;  %v2980_v23 = vpop.f32.mrb[34].mxu0 }
 0x844   : > { %v1308_v24 = vpop.f32.mrb[35].mxu0  ;;  %2982 = vmatpush3.bf16.msra.mxu1 %v1321_v20  ;;  %2983 = vmatprep.mubr.msk.bf16.mxu1 %vm3402_vm0, %v3401_v0 }
 0x845   : > { %v1409_v25 = vsub.f32 %v3692_v16, %v1308_v24  ;;  %2993 = vmatprep.subr.bf16.mxu1 %v3401_v0 }
 0x84b   : > { %2984 = vmatmul.mubr.msk.bf16.vlgmr.msra.gmra.mrb[32].mxu1 %vm460_vm2, %v3683_v10 }
 0x84c   : > { %2995 = vmatprep.mubr.msk.bf16.mxu1 %vm3402_vm0, %v3401_v0 }
 0x916   : > { %v3827_v26 = vpop.f32.mrb[28].mxu1 }
 0x917   : > { %v3830_v27 = vmax.f32 %v2444_v41, %v3827_v26  ;;  %v2973_v29 = vpop.f32.mrb[29].mxu1 }
 0x918   : > { %v3832_v30 = vpop.f32.mrb[30].mxu1 }
 0x919   : > { %v3835_v32 = vmax.f32 %v2445_v44, %v3832_v30  ;;  %v2974_v33 = vpop.f32.mrb[31].mxu1 }
 0x91e   : > { %v1357_v34 = vpop.f32.mrb[32].mxu1 }
 0x91f   : > { %v2985_v36 = vpop.f32.mrb[33].mxu1  ;;  %v1364_v38 = vmax.f32 %v1357_v34, 0.0 }
 0x920   : > { %v1360_v37 = vpop.f32.mrb[34].mxu1 }
 0x921   : > { %v1365_v42 = vmax.f32 %v1360_v37, 0.0  ;;  %v2986_v45 = vpop.f32.mrb[35].mxu1 }
 0x923   : > { %v1366_v46 = vpack.c.bf16 %v1365_v42, %v1364_v38 }
 0x925   : > { %2988 = vmatpush3.bf16.msra.mxu0 %v1366_v46 }
 0x926   : > { %2999 = vmatprep.subr.bf16.mxu0 %v3401_v0 }
 0x928   : > { %2990 = vmatmul.mubr.msk.bf16.vlgmr.msra.gmra.mrb[36].mxu0 %vm639_vm3, %v3698_v28 }
 0x929   : > { %3001 = vmatprep.mubr.msk.bf16.mxu0 %vm3402_vm0, %v3401_v0 }
 0x9fb   : > { %v1401_v41 = vpop.f32.mrb[36].mxu0 }
 0x9fc   : > { %v1410_v44 = vadd.f32 %v1408_v22, %v1401_v41  ;;  %v3842_v47 = vadd.f32 %v2979_v19, %v1401_v41  ;;  %v2991_v48 = vpop.f32.mrb[37].mxu0 }
 0x9fd   : > { %v1404_v50 = vpop.f32.mrb[38].mxu0 }
 0x9fe   : > { %v1411_v51 = vadd.f32 %v1409_v25, %v1404_v50  ;;  %v3844_v52 = vadd.f32 %v2980_v23, %v1404_v50  ;;  %v2992_v53 = vpop.f32.mrb[39].mxu0 }
 0x9ff   : > { %v2757_v53 = vld [vmem:[%s3628_s20 + $0x14] sm:$0xf] }
 0xa00   : > { %v1412_v54 = vpack.c.bf16 %v1411_v51, %v1410_v44 }
 0xa02   : > { %2994 = vmatpush3.bf16.msra.mxu1 %v1412_v54  ;;  %v1741_v54 = vsel %vm464_vm1, %v2757_v53, 0 }
 0xa03   : > { %3129 = vmatprep.subr.msk.bf16.mxu1 %vm464_vm1, %v2749_v55 }
 0xa05   : > { %2996 = vmatmul.mubr.msk.bf16.vlgmr.msra.gmra.mrb[36].mxu1 %vm639_vm3, %v3713_v39 }
 0xa06   : > { %3006 = vmatpush3.bf16.msra.mxu1 %v1505_v58  ;;  %3007 = vmatprep.mubr.msk.bf16.mxu1 %vm460_vm2, %v3656_v5 }
 0xa07   : > { %3017 = vmatprep.subr.bf16.mxu1 %v3401_v0 }
 0xa0d   : > { %3008 = vmatmul.mubr.msk.bf16.vlgmr.msra.gmra.mrb[40].mxu1 %vm460_vm2, %v3666_v7 }
 0xa0e   : > { %3019 = vmatprep.mubr.msk.bf16.mxu1 %vm3402_vm0, %v3401_v0 }
 0xad8   : > { %v1447_v60 = vpop.f32.mrb[36].mxu1 }
 0xad9   : > { %v2997_v61 = vpop.f32.mrb[37].mxu1  ;;  %v1454_v1 = vmax.f32 %v1447_v60, 0.0 }
 0xada   : > { %v1450_v63 = vpop.f32.mrb[38].mxu1 }
 0xadb   : > { %v1455_v2 = vmax.f32 %v1450_v63, 0.0  ;;  %v2998_v3 = vpop.f32.mrb[39].mxu1 }
 0xadc   : > { %v2758_v3 = vld [vmem:[%s3635_s1 + $0x14] sm:$0xf] }
 0xadd   : > { %v1456_v4 = vpack.c.bf16 %v1455_v2, %v1454_v1  ;;  %v1793_v6 = vsel %vm464_vm1, %v2758_v3, 0 }
 0xadf   : > { %3000 = vmatpush3.bf16.msra.mxu0 %v1456_v4 }
 0xae0   : > { %v3009_v8 = vpop.f32.mrb[40].mxu1  ;;  %3011 = vmatprep.subr.bf16.mxu0 %v3401_v0 }
 0xae1   : > { %v1541_v13 = vpop.f32.mrb[41].mxu1 }
 0xae2   : > { %v1644_v14 = vsub.f32 %v3689_v11, %v1541_v13  ;;  %3002 = vmatmul.mubr.msk.bf16.vlgmr.msra.gmra.mrb[40].mxu0 %vm639_vm3, %v3730_v49  ;;  %v3010_v17 = vpop.f32.mrb[42].mxu1 }
 0xae3   : > { %v1544_v18 = vpop.f32.mrb[43].mxu1  ;;  %3012 = vmatpush3.bf16.msra.mxu0 %v1557_v12  ;;  %3013 = vmatprep.mubr.msk.bf16.mxu0 %vm3402_vm0, %v3401_v0 }
 0xae4   : > { %v1645_v19 = vsub.f32 %v3692_v16, %v1544_v18  ;;  %3023 = vmatprep.subr.bf16.mxu0 %v3401_v0 }
 0xaea   : > { %3014 = vmatmul.mubr.msk.bf16.vlgmr.msra.gmra.mrb[44].mxu0 %vm460_vm2, %v3683_v10 }
 0xaeb   : > { %3025 = vmatprep.mubr.msk.bf16.mxu0 %vm3402_vm0, %v3401_v0 }
 0xbb5   : > { %v3872_v20 = vpop.f32.mrb[40].mxu0 }
 0xbb6   : > { %v2448_v21 = vmax.f32 %v3830_v27, %v3872_v20  ;;  %v3003_v22 = vpop.f32.mrb[41].mxu0 }
 0xbb7   : > { %v3876_v23 = vpop.f32.mrb[42].mxu0 }
 0xbb8   : > { %v2449_v24 = vmax.f32 %v3835_v32, %v3876_v23  ;;  %v3004_v25 = vpop.f32.mrb[43].mxu0 }
 0xbbd   : > { %v1593_v29 = vpop.f32.mrb[44].mxu0 }
 0xbbe   : > { %v3015_v33 = vpop.f32.mrb[45].mxu0  ;;  %v1600_v36 = vmax.f32 %v1593_v29, 0.0 }
 0xbbf   : > { %v1596_v34 = vpop.f32.mrb[46].mxu0 }
 0xbc0   : > { %v1601_v37 = vmax.f32 %v1596_v34, 0.0  ;;  %v3016_v38 = vpop.f32.mrb[47].mxu0 }
 0xbc2   : > { %v1602_v42 = vpack.c.bf16 %v1601_v37, %v1600_v36 }
 0xbc4   : > { %3018 = vmatpush3.bf16.msra.mxu1 %v1602_v42 }
 0xbc5   : > { %3029 = vmatprep.subr.bf16.mxu1 %v3401_v0 }
 0xbc7   : > { %3020 = vmatmul.mubr.msk.bf16.vlgmr.msra.gmra.mrb[44].mxu1 %vm639_vm3, %v3698_v28 }
 0xbc8   : > { %3031 = vmatprep.mubr.msk.bf16.mxu1 %vm3402_vm0, %v3401_v0 }
 0xc9a   : > { %v1637_v27 = vpop.f32.mrb[44].mxu1 }
 0xc9b   : > { %v1646_v32 = vadd.f32 %v1644_v14, %v1637_v27  ;;  %v3885_v45 = vadd.f32 %v3009_v8, %v1637_v27  ;;  %v3021_v46 = vpop.f32.mrb[45].mxu1 }
 0xc9c   : > { %v1640_v41 = vpop.f32.mrb[46].mxu1 }
 0xc9d   : > { %v1647_v44 = vadd.f32 %v1645_v19, %v1640_v41  ;;  %v3887_v48 = vadd.f32 %v3010_v17, %v1640_v41  ;;  %v3022_v50 = vpop.f32.mrb[47].mxu1 }
 0xc9f   : > { %v1648_v51 = vpack.c.bf16 %v1647_v44, %v1646_v32 }
 0xca1   : > { %3024 = vmatpush3.bf16.msra.mxu0 %v1648_v51 }
 0xca2   : > { %3130 = vmatprep.subr.msk.bf16.mxu0 %vm464_vm1, %v2757_v53 }
 0xca4   : > { %3026 = vmatmul.mubr.msk.bf16.vlgmr.msra.gmra.mrb[48].mxu0 %vm639_vm3, %v3713_v39 }
 0xca5   : > { %3036 = vmatpush3.bf16.msra.mxu0 %v1741_v54  ;;  %3037 = vmatprep.mubr.msk.bf16.mxu0 %vm460_vm2, %v3656_v5 }
 0xca6   : > { %3047 = vmatprep.subr.bf16.mxu0 %v3401_v0 }
 0xcac   : > { %3038 = vmatmul.mubr.msk.bf16.vlgmr.msra.gmra.mrb[52].mxu0 %vm460_vm2, %v3666_v7 }
 0xcad   : > { %3049 = vmatprep.mubr.msk.bf16.mxu0 %vm3402_vm0, %v3401_v0 }
 0xd77   : > { %v1683_v55 = vpop.f32.mrb[48].mxu0 }
 0xd78   : > { %v3027_v58 = vpop.f32.mrb[49].mxu0  ;;  %v1690_v61 = vmax.f32 %v1683_v55, 0.0  ;;  %v2765_v55 = vld [vmem:[%s3628_s20 + $0x18] sm:$0xf] }
 0xd79   : > { %v1686_v60 = vpop.f32.mrb[50].mxu0  ;;  %v1977_v58 = vsel %vm464_vm1, %v2765_v55, 0 }
 0xd7a   : > { %v1691_v63 = vmax.f32 %v1686_v60, 0.0  ;;  %v3028_v1 = vpop.f32.mrb[51].mxu0 }
 0xd7c   : > { %v1692_v2 = vpack.c.bf16 %v1691_v63, %v1690_v61 }
 0xd7e   : > { %3030 = vmatpush3.bf16.msra.mxu1 %v1692_v2 }
 0xd7f   : > { %v3039_v4 = vpop.f32.mrb[52].mxu0  ;;  %3041 = vmatprep.subr.bf16.mxu1 %v3401_v0 }
 0xd80   : > { %v1777_v8 = vpop.f32.mrb[53].mxu0 }
 0xd81   : > { %v1880_v12 = vsub.f32 %v3689_v11, %v1777_v8  ;;  %3032 = vmatmul.mubr.msk.bf16.vlgmr.msra.gmra.mrb[48].mxu1 %vm639_vm3, %v3730_v49  ;;  %v3040_v13 = vpop.f32.mrb[54].mxu0 }
 0xd82   : > { %v1780_v14 = vpop.f32.mrb[55].mxu0  ;;  %3042 = vmatpush3.bf16.msra.mxu1 %v1793_v6  ;;  %3043 = vmatprep.mubr.msk.bf16.mxu1 %vm3402_vm0, %v3401_v0  ;;  %v2766_v6 = vld [vmem:[%s3635_s1 + $0x18] sm:$0xf] }
 0xd83   : > { %v1881_v17 = vsub.f32 %v3692_v16, %v1780_v14  ;;  %3053 = vmatprep.subr.bf16.mxu1 %v3401_v0 }
 0xd89   : > { %3044 = vmatmul.mubr.msk.bf16.vlgmr.msra.gmra.mrb[52].mxu1 %vm460_vm2, %v3683_v10 }
 0xd8a   : > { %3055 = vmatprep.mubr.msk.bf16.mxu1 %vm3402_vm0, %v3401_v0 }
 0xe54   : > { %v3915_v18 = vpop.f32.mrb[48].mxu1 }
 0xe55   : > { %v3918_v19 = vmax.f32 %v2448_v21, %v3915_v18  ;;  %v3033_v22 = vpop.f32.mrb[49].mxu1 }
 0xe56   : > { %v3920_v25 = vpop.f32.mrb[50].mxu1 }
 0xe57   : > { %v3923_v29 = vmax.f32 %v2449_v24, %v3920_v25  ;;  %v3034_v33 = vpop.f32.mrb[51].mxu1 }
 0xe5c   : > { %v1829_v34 = vpop.f32.mrb[52].mxu1 }
 0xe5d   : > { %v3045_v36 = vpop.f32.mrb[53].mxu1  ;;  %v1836_v38 = vmax.f32 %v1829_v34, 0.0 }
 0xe5e   : > { %v1832_v37 = vpop.f32.mrb[54].mxu1 }
 0xe5f   : > { %v1837_v42 = vmax.f32 %v1832_v37, 0.0  ;;  %v3046_v27 = vpop.f32.mrb[55].mxu1 }
 0xe61   : > { %v1838_v32 = vpack.c.bf16 %v1837_v42, %v1836_v38 }
 0xe63   : > { %3048 = vmatpush3.bf16.msra.mxu0 %v1838_v32 }
 0xe64   : > { %3059 = vmatprep.subr.bf16.mxu0 %v3401_v0 }
 0xe66   : > { %3050 = vmatmul.mubr.msk.bf16.vlgmr.msra.gmra.mrb[56].mxu0 %vm639_vm3, %v3698_v28 }
 0xe67   : > { %3061 = vmatprep.mubr.msk.bf16.mxu0 %vm3402_vm0, %v3401_v0 }
 0xf39   : > { %v1873_v21 = vpop.f32.mrb[56].mxu0 }
 0xf3a   : > { %v1882_v24 = vadd.f32 %v1880_v12, %v1873_v21  ;;  %v3930_v46 = vadd.f32 %v3039_v4, %v1873_v21  ;;  %v3051_v41 = vpop.f32.mrb[57].mxu0  ;;  %v2029_v12 = vsel %vm464_vm1, %v2766_v6, 0 }
 0xf3b   : > { %v1876_v44 = vpop.f32.mrb[58].mxu0 }
 0xf3c   : > { %v1883_v50 = vadd.f32 %v1881_v17, %v1876_v44  ;;  %v3932_v51 = vadd.f32 %v3040_v13, %v1876_v44  ;;  %v3052_v53 = vpop.f32.mrb[59].mxu0 }
 0xf3e   : > { %v1884_v54 = vpack.c.bf16 %v1883_v50, %v1882_v24 }
 0xf40   : > { %3054 = vmatpush3.bf16.msra.mxu1 %v1884_v54 }
 0xf41   : > { %3131 = vmatprep.subr.msk.bf16.mxu1 %vm464_vm1, %v2765_v55 }
 0xf43   : > { %3056 = vmatmul.mubr.msk.bf16.vlgmr.msra.gmra.mrb[56].mxu1 %vm639_vm3, %v3713_v39 }
 0xf44   : > { %3066 = vmatpush3.bf16.msra.mxu1 %v1977_v58  ;;  %3067 = vmatprep.mubr.msk.bf16.mxu1 %vm460_vm2, %v3656_v5 }
 0xf45   : > { %3077 = vmatprep.subr.bf16.mxu1 %v3401_v0 }
 0xf4b   : > { %3068 = vmatmul.mubr.msk.bf16.vlgmr.msra.gmra.mrb[60].mxu1 %vm460_vm2, %v3666_v7 }
 0xf4c   : > { %3079 = vmatprep.mubr.msk.bf16.mxu1 %vm3402_vm0, %v3401_v0 }
0x1016   : > { %v1919_v60 = vpop.f32.mrb[56].mxu1 }
0x1017   : > { %v3057_v61 = vpop.f32.mrb[57].mxu1  ;;  %v1926_v1 = vmax.f32 %v1919_v60, 0.0 }
0x1018   : > { %v1922_v63 = vpop.f32.mrb[58].mxu1 }
0x1019   : > { %v1927_v2 = vmax.f32 %v1922_v63, 0.0  ;;  %v3058_v3 = vpop.f32.mrb[59].mxu1 }
0x101b   : > { %v1928_v4 = vpack.c.bf16 %v1927_v2, %v1926_v1  ;;  %v2773_v2 = vld [vmem:[%s3628_s20 + $0x1c] sm:$0xf]  ;;  %s2709_s20 = sshll.u32 %s3624_s19, 4 }
0x101c   : > { %v2213_v3 = vsel %vm464_vm1, %v2773_v2, 0 }
0x101d   : > { %3060 = vmatpush3.bf16.msra.mxu0 %v1928_v4 }
0x101e   : > { %v3069_v8 = vpop.f32.mrb[60].mxu1  ;;  %3071 = vmatprep.subr.bf16.mxu0 %v3401_v0 }
0x101f   : > { %v2013_v13 = vpop.f32.mrb[61].mxu1 }
0x1020   : > { %v2116_v14 = vsub.f32 %v3689_v11, %v2013_v13  ;;  %3062 = vmatmul.mubr.msk.bf16.vlgmr.msra.gmra.mrb[60].mxu0 %vm639_vm3, %v3730_v49  ;;  %v3070_v17 = vpop.f32.mrb[62].mxu1 }
0x1021   : > { %v2016_v22 = vpop.f32.mrb[63].mxu1  ;;  %3072 = vmatpush3.bf16.msra.mxu0 %v2029_v12  ;;  %3073 = vmatprep.mubr.msk.bf16.mxu0 %vm3402_vm0, %v3401_v0 }
0x1022   : > { %v2117_v33 = vsub.f32 %v3692_v16, %v2016_v22  ;;  %3083 = vmatprep.subr.bf16.mxu0 %v3401_v0  ;;  %v2774_v22 = vld [vmem:[%s3635_s1 + $0x1c] sm:$0xf]  ;;  %s431_s1 = scalar_lea.vmem [#allocation7], %s2709_s20 }
0x1023   : > { %s2571_s28 = sshll.u32 %s431_s1, 4  ;;  %s4060_s28 = int_to_ptr.vmem [resolvable:$true] %s2571_s28 }
0x1024   : > { %s3309_s24 = scalar_lea.vmem %s4060_s28, 256  ;;  %p3316_p10 = scmp.lt.s32.totalorder %s4060_s28, %s3314_s25 }
0x1025   : > { %p3310_p3 = scmp.ne.s32.totalorder %s4060_s28, %s3309_s24  ;;  %p3317_p9 = scmp.lt.s32.totalorder %s3315_s29, %s3309_s24 }
0x1027   : > { %p3311_p13 = pnand %p3310_p3, %p4146_p12  ;;  %p3318_p11 = por %p3317_p9, %p3316_p10 }
0x1028   : > { %3074 = vmatmul.mubr.msk.bf16.vlgmr.msra.gmra.mrb[64].mxu0 %vm460_vm2, %v3683_v10 }
0x1029   : > { %3085 = vmatprep.mubr.msk.bf16.mxu0 %vm3402_vm0, %v3401_v0  ;;  %p3312_p7 = pneg %p3311_p13 }
0x102b   : > { %p3319_p1 = pnand %p3318_p11, %p3312_p7 }
0x10f3   : > { %v3960_v34 = vpop.f32.mrb[60].mxu0 }
0x10f4   : > { %v2452_v36 = vmax.f32 %v3918_v19, %v3960_v34  ;;  %v3063_v37 = vpop.f32.mrb[61].mxu0 }
0x10f5   : > { %v3964_v38 = vpop.f32.mrb[62].mxu0 }
0x10f6   : > { %v2453_v42 = vmax.f32 %v3923_v29, %v3964_v38  ;;  %v3064_v27 = vpop.f32.mrb[63].mxu0 }
0x10fb   : > { %v2065_v32 = vpop.f32.mrb[64].mxu0 }
0x10fc   : > { %v3075_v21 = vpop.f32.mrb[65].mxu0  ;;  %v2072_v41 = vmax.f32 %v2065_v32, 0.0 }
0x10fd   : > { %v2068_v24 = vpop.f32.mrb[66].mxu0 }
0x10fe   : > { %v2073_v44 = vmax.f32 %v2068_v24, 0.0  ;;  %v3076_v50 = vpop.f32.mrb[67].mxu0 }
0x1100   : > { %v2074_v53 = vpack.c.bf16 %v2073_v44, %v2072_v41 }
0x1102   : > { %3078 = vmatpush3.bf16.msra.mxu1 %v2074_v53 }
0x1103   : > { %3089 = vmatprep.subr.bf16.mxu1 %v3401_v0 }
0x1105   : > { %3080 = vmatmul.mubr.msk.bf16.vlgmr.msra.gmra.mrb[64].mxu1 %vm639_vm3, %v3698_v28 }
0x1106   : > { %3091 = vmatprep.mubr.msk.bf16.mxu1 %vm3402_vm0, %v3401_v0 }
0x11d8   : > { %v2109_v19 = vpop.f32.mrb[64].mxu1 }
0x11d9   : > { %v2118_v29 = vadd.f32 %v2116_v14, %v2109_v19  ;;  %v3973_v54 = vadd.f32 %v3069_v8, %v2109_v19  ;;  %v3081_v55 = vpop.f32.mrb[65].mxu1 }
0x11da   : > { %v2112_v58 = vpop.f32.mrb[66].mxu1 }
0x11db   : > { %v2119_v60 = vadd.f32 %v2117_v33, %v2112_v58  ;;  %v3975_v61 = vadd.f32 %v3070_v17, %v2112_v58  ;;  %v3082_v63 = vpop.f32.mrb[67].mxu1 }
0x11dd   : > { %v2120_v1 = vpack.c.bf16 %v2119_v60, %v2118_v29 }
0x11df   : > { %3084 = vmatpush3.bf16.msra.mxu0 %v2120_v1 }
0x11e0   : > { %3132 = vmatprep.subr.msk.bf16.mxu0 %vm464_vm1, %v2773_v2 }
0x11e2   : > { %3086 = vmatmul.mubr.msk.bf16.vlgmr.msra.gmra.mrb[68].mxu0 %vm639_vm3, %v3713_v39 }
0x11e3   : > { %3096 = vmatpush3.bf16.msra.mxu0 %v2213_v3  ;;  %3097 = vmatprep.mubr.msk.bf16.mxu0 %vm460_vm2, %v3656_v5  ;;  %v2265_v5 = vsel %vm464_vm1, %v2774_v22, 0 }
0x11e4   : > { %3107 = vmatprep.subr.bf16.mxu0 %v3401_v0 }
0x11ea   : > { %3098 = vmatmul.mubr.msk.bf16.vlgmr.msra.gmra.mrb[72].mxu0 %vm460_vm2, %v3666_v7 }
0x11eb   : > { %3109 = vmatprep.mubr.msk.bf16.mxu0 %vm3402_vm0, %v3401_v0 }
0x12b5   : > { %v2155_v4 = vpop.f32.mrb[68].mxu0 }
0x12b6   : > { %v3087_v6 = vpop.f32.mrb[69].mxu0  ;;  %v2162_v12 = vmax.f32 %v2155_v4, 0.0 }
0x12b7   : > { %v2158_v8 = vpop.f32.mrb[70].mxu0 }
0x12b8   : > { %v2163_v13 = vmax.f32 %v2158_v8, 0.0  ;;  %v3088_v14 = vpop.f32.mrb[71].mxu0 }
0x12ba   : > { %v2164_v17 = vpack.c.bf16 %v2163_v13, %v2162_v12 }
0x12bc   : > { %3090 = vmatpush3.bf16.msra.mxu1 %v2164_v17 }
0x12bd   : > { %v3099_v33 = vpop.f32.mrb[72].mxu0  ;;  %3101 = vmatprep.subr.bf16.mxu1 %v3401_v0 }
0x12be   : > { %v2249_v37 = vpop.f32.mrb[73].mxu0 }
0x12bf   : > { %v2352_v7 = vsub.f32 %v3689_v11, %v2249_v37  ;;  %3092 = vmatmul.mubr.msk.bf16.vlgmr.msra.gmra.mrb[68].mxu1 %vm639_vm3, %v3730_v49  ;;  %v3100_v27 = vpop.f32.mrb[74].mxu0 }
0x12c0   : > { %v2252_v32 = vpop.f32.mrb[75].mxu0  ;;  %3102 = vmatpush3.bf16.msra.mxu1 %v2265_v5  ;;  %3103 = vmatprep.mubr.msk.bf16.mxu1 %vm3402_vm0, %v3401_v0 }
0x12c1   : > { %v2353_v21 = vsub.f32 %v3692_v16, %v2252_v32  ;;  %3113 = vmatprep.subr.bf16.mxu1 %v3401_v0 }
0x12c7   : > { %3104 = vmatmul.mubr.msk.bf16.vlgmr.msra.gmra.mrb[72].mxu1 %vm460_vm2, %v3683_v10 }
0x12c8   : > { %3115 = vmatprep.mubr.msk.bf16.mxu1 %vm3402_vm0, %v3401_v0 }
0x1392   : > { %v4003_v11 = vpop.f32.mrb[68].mxu1 }
0x1393   : > { %v2454_v24 = vmax.f32 %v2452_v36, %v4003_v11  ;;  %v3093_v41 = vpop.f32.mrb[69].mxu1 }
0x1394   : > { %v4006_v44 = vpop.f32.mrb[70].mxu1 }
0x1395   : > { %v2455_v50 = vmax.f32 %v2453_v42, %v4006_v44  ;;  %v3094_v53 = vpop.f32.mrb[71].mxu1 }
0x139a   : > { %v2301_v19 = vpop.f32.mrb[72].mxu1 }
0x139b   : > { %v3105_v16 = vpop.f32.mrb[73].mxu1  ;;  %v2308_v55 = vmax.f32 %v2301_v19, 0.0 }
0x139c   : > { %v2304_v29 = vpop.f32.mrb[74].mxu1 }
0x139d   : > { %v2309_v58 = vmax.f32 %v2304_v29, 0.0  ;;  %v3106_v60 = vpop.f32.mrb[75].mxu1 }
0x139f   : > { %v2310_v10 = vpack.c.bf16 %v2309_v58, %v2308_v55 }
0x13a1   : > { %3108 = vmatpush3.bf16.msra.mxu0 %v2310_v10 }
0x13a2   : > { %3119 = vmatprep.subr.bf16.mxu0 %v3401_v0 }
0x13a4   : > { %3110 = vmatmul.mubr.msk.bf16.vlgmr.msra.gmra.mrb[76].mxu0 %vm639_vm3, %v3698_v28 }
0x13a5   : > { %3121 = vmatprep.mubr.msk.bf16.mxu0 %vm3402_vm0, %v3401_v0 }
0x1477   : > { %v2345_v36 = vpop.f32.mrb[76].mxu0 }
0x1478   : > { %v2354_v63 = vadd.f32 %v2352_v7, %v2345_v36  ;;  %v4014_v42 = vadd.f32 %v3099_v33, %v2345_v36  ;;  %v3111_v1 = vpop.f32.mrb[77].mxu0 }
0x1479   : > { %v2348_v2 = vpop.f32.mrb[78].mxu0 }
0x147a   : > { %v2355_v3 = vadd.f32 %v2353_v21, %v2348_v2  ;;  %v4016_v4 = vadd.f32 %v3100_v27, %v2348_v2  ;;  %v3112_v6 = vpop.f32.mrb[79].mxu0 }
0x147c   : > { %v2356_v8 = vpack.c.bf16 %v2355_v3, %v2354_v63 }
0x147e   : > { %3114 = vmatpush3.bf16.msra.mxu1 %v2356_v8 }
0x1481   : > { %3116 = vmatmul.mubr.msk.bf16.vlgmr.msra.gmra.mrb[76].mxu1 %vm639_vm3, %v3713_v39 }
0x1554   : > { %v2391_v12 = vpop.f32.mrb[76].mxu1 }
0x1555   : > { %v3117_v28 = vpop.f32.mrb[77].mxu1  ;;  %v2398_v14 = vmax.f32 %v2391_v12, 0.0 }
0x1556   : > { %v2394_v13 = vpop.f32.mrb[78].mxu1 }
0x1557   : > { %v2399_v0 = vmax.f32 %v2394_v13, 0.0  ;;  %v3118_v17 = vpop.f32.mrb[79].mxu1 }
0x1559   : > { %v2400_v22 = vpack.c.bf16 %v2399_v0, %v2398_v14 }
0x155b   : > { %3120 = vmatpush3.bf16.msra.mxu0 %v2400_v22 }
0x155e   : > { %3122 = vmatmul.mubr.msk.bf16.vlgmr.msra.gmra.mrb[80].mxu0 %vm639_vm3, %v3730_v49 }
0x1631   : > { %v2435_v33 = vpop.f32.mrb[80].mxu0 }
0x1632   : > { %v2456_v5 = vmax.f32 %v2454_v24, %v2435_v33  ;;  %v3123_v37 = vpop.f32.mrb[81].mxu0 }
0x1633   : > { %v2438_v7 = vpop.f32.mrb[82].mxu0 }
0x1634   : > { %v2458_v27 = vsub.f32 %v3745_v57, %v2456_v5  ;;  %v2464_v32 = vsub.f32 %v3784_v40, %v2456_v5  ;;  %v2470_v39 = vsub.f32 %v3827_v26, %v2456_v5  ;;  %v2476_v21 = vsub.f32 %v3872_v20, %v2456_v5  ;;  %v3124_v41 = vpop.f32.mrb[83].mxu0 }
0x1635   : > { %v2482_v53 = vsub.f32 %v3915_v18, %v2456_v5  ;;  %v2488_v19 = vsub.f32 %v3960_v34, %v2456_v5  ;;  %v2494_v16 = vsub.f32 %v4003_v11, %v2456_v5  ;;  %v2500_v49 = vsub.f32 %v2435_v33, %v2456_v5 }
0x1636   : > { %v2460_v29 = vmul.f32 1.442695, %v2458_v27  ;;  %v2466_v24 = vmul.f32 1.442695, %v2464_v32  ;;  %v2472_v55 = vmul.f32 1.442695, %v2470_v39  ;;  %v2457_v58 = vmax.f32 %v2455_v50, %v2438_v7 }
0x1637   : > { %v2478_v60 = vmul.f32 1.442695, %v2476_v21  ;;  %v2484_v57 = vmul.f32 1.442695, %v2482_v53  ;;  %v2490_v40 = vmul.f32 1.442695, %v2488_v19 }
0x1638   : > { %3213 = vpow2.f32 %v2460_v29  ;;  %v2459_v26 = vsub.f32 %v3747_v59, %v2457_v58  ;;  %v2465_v20 = vsub.f32 %v3788_v43, %v2457_v58  ;;  %v2471_v18 = vsub.f32 %v3832_v30, %v2457_v58 }
0x1639   : > { %3215 = vpow2.f32 %v2466_v24  ;;  %v2477_v34 = vsub.f32 %v3876_v23, %v2457_v58  ;;  %v2496_v11 = vmul.f32 1.442695, %v2494_v16  ;;  %v2483_v10 = vsub.f32 %v3920_v25, %v2457_v58 }
0x163a   : > { %3217 = vpow2.f32 %v2472_v55  ;;  %v2489_v36 = vsub.f32 %v3964_v38, %v2457_v58  ;;  %v2502_v50 = vmul.f32 1.442695, %v2500_v49  ;;  %v2462_v63 = vmul.f32 1.442695, %v2459_v26 }
0x163b   : > { %3219 = vpow2.f32 %v2478_v60  ;;  %v2495_v1 = vsub.f32 %v4006_v44, %v2457_v58  ;;  %v2468_v59 = vmul.f32 1.442695, %v2465_v20  ;;  %v2501_v2 = vsub.f32 %v2438_v7, %v2457_v58 }
0x163c   : > { %3221 = vpow2.f32 %v2484_v57  ;;  %v2474_v43 = vmul.f32 1.442695, %v2471_v18  ;;  %v2480_v30 = vmul.f32 1.442695, %v2477_v34  ;;  %v2486_v23 = vmul.f32 1.442695, %v2483_v10 }
0x163d   : > { %3223 = vpow2.f32 %v2490_v40  ;;  %v2492_v3 = vmul.f32 1.442695, %v2489_v36  ;;  %v2498_v38 = vmul.f32 1.442695, %v2495_v1  ;;  %v2504_v12 = vmul.f32 1.442695, %v2501_v2 }
0x163e   : > { %3225 = vpow2.f32 %v2496_v11 }
0x163f   : > { %3227 = vpow2.f32 %v2502_v50 }
0x1640   : > { %3229 = vpow2.f32 %v2462_v63 }
0x1641   : > { %3231 = vpow2.f32 %v2468_v59 }
0x1642   : > { %v3214_v25 = vpop.eup %3213  ;;  %3233 = vpow2.f32 %v2474_v43 }
0x1643   : > { %v3216_v6 = vpop.eup %3215  ;;  %v2522_v8 = vmul.f32 %v3214_v25, %v3705_v31  ;;  %3235 = vpow2.f32 %v2480_v30 }
0x1644   : > { %v3218_v44 = vpop.eup %3217  ;;  %v2506_v28 = vadd.f32 %v3216_v6, %v3214_v25  ;;  %v2524_v13 = vmul.f32 %v3216_v6, %v3754_v9  ;;  %3237 = vpow2.f32 %v2486_v23 }
0x1645   : > { %v3220_v14 = vpop.eup %3219  ;;  %v2528_v0 = vmul.f32 %v3218_v44, %v3797_v56  ;;  %3239 = vpow2.f32 %v2492_v3 }
0x1646   : > { %v3222_v17 = vpop.eup %3221  ;;  %v2508_v22 = vadd.f32 %v3218_v44, %v2506_v28  ;;  %v2526_v33 = vadd.f32 %v2524_v13, %v2522_v8  ;;  %v2532_v5 = vmul.f32 %v3220_v14, %v3842_v47  ;;  %3241 = vpow2.f32 %v2498_v38 }
0x1647   : > { %v3224_v37 = vpop.eup %3223  ;;  %v2536_v31 = vmul.f32 %v3222_v17, %v3885_v45  ;;  %3243 = vpow2.f32 %v2504_v12 }
0x1648   : > { %v3226_v7 = vpop.eup %3225  ;;  %v2510_v27 = vadd.f32 %v3220_v14, %v2508_v22  ;;  %v2530_v32 = vadd.f32 %v2528_v0, %v2526_v33  ;;  %v2540_v9 = vmul.f32 %v3224_v37, %v3930_v46 }
0x1649   : > { %v3228_v39 = vpop.eup %3227  ;;  %v2544_v21 = vmul.f32 %v3226_v7, %v3973_v54 }
0x164a   : > { %v3230_v56 = vpop.eup %3229  ;;  %v2512_v41 = vadd.f32 %v3222_v17, %v2510_v27  ;;  %v2534_v53 = vadd.f32 %v2532_v5, %v2530_v32  ;;  %v2548_v19 = vmul.f32 %v3228_v39, %v4014_v42 }
0x164b   : > { %v3232_v16 = vpop.eup %3231  ;;  %v2523_v47 = vmul.f32 %v3230_v56, %v3707_v35 }
0x164c   : > { %v3234_v49 = vpop.eup %3233  ;;  %v2514_v29 = vadd.f32 %v3224_v37, %v2512_v41  ;;  %v2538_v45 = vadd.f32 %v2536_v31, %v2534_v53  ;;  %v2507_v24 = vadd.f32 %v3232_v16, %v3230_v56  ;;  %v2525_v55 = vmul.f32 %v3232_v16, %v3756_v15 }
0x164d   : > { %v3236_v58 = vpop.eup %3235  ;;  %v2529_v46 = vmul.f32 %v3234_v49, %v3799_v62 }
0x164e   : > { %v3238_v60 = vpop.eup %3237  ;;  %v2516_v57 = vadd.f32 %v3226_v7, %v2514_v29  ;;  %v2542_v54 = vadd.f32 %v2540_v9, %v2538_v45  ;;  %v2509_v40 = vadd.f32 %v3234_v49, %v2507_v24  ;;  %v2527_v26 = vadd.f32 %v2525_v55, %v2523_v47 }
0x164f   : > { %v3240_v20 = vpop.eup %3239  ;;  %v2533_v42 = vmul.f32 %v3236_v58, %v3844_v52  ;;  %v2537_v18 = vmul.f32 %v3238_v60, %v3887_v48 }
0x1650   : > { %v3242_v35 = vpop.eup %3241  ;;  %v2518_v34 = vadd.f32 %v3228_v39, %v2516_v57  ;;  %v2546_v11 = vadd.f32 %v2544_v21, %v2542_v54  ;;  %v2511_v10 = vadd.f32 %v3236_v58, %v2509_v40  ;;  %v2531_v36 = vadd.f32 %v2529_v46, %v2527_v26 }
0x1651   : > { %v3244_v15 = vpop.eup %3243  ;;  %v2541_v50 = vmul.f32 %v3240_v20, %v3932_v51  ;;  %v2545_v62 = vmul.f32 %v3242_v35, %v3975_v61 }
0x1652   : > { %3245 = vrcp.f32 %v2518_v34  ;;  %v2550_v63 = vadd.f32 %v2548_v19, %v2546_v11  ;;  %v2513_v1 = vadd.f32 %v3238_v60, %v2511_v10  ;;  %v2535_v59 = vadd.f32 %v2533_v42, %v2531_v36 }
0x1653   : > { %v2549_v52 = vmul.f32 %v3244_v15, %v4016_v4 }
0x1654   : > { %v2515_v2 = vadd.f32 %v3240_v20, %v2513_v1  ;;  %v2539_v48 = vadd.f32 %v2537_v18, %v2535_v59 }
0x1656   : > { %v2517_v43 = vadd.f32 %v3242_v35, %v2515_v2  ;;  %v2543_v30 = vadd.f32 %v2541_v50, %v2539_v48 }
0x1658   : > { %v2519_v23 = vadd.f32 %v3244_v15, %v2517_v43  ;;  %v2547_v3 = vadd.f32 %v2545_v62, %v2543_v30 }
0x165a   : > { %3247 = vrcp.f32 %v2519_v23  ;;  %v2551_v51 = vadd.f32 %v2549_v52, %v2547_v3 }
0x165c   : > { %v3246_v25 = vpop.eup %3245 }
0x165d   : > { %v2552_v61 = vmul.f32 %v3246_v25, %v2550_v63 }
0x165f   : > { %2554 = vst.msk [vmem:[%s431_s1] sm:$0xff] %vm639_vm3, %v2552_v61 }
0x1664   : > { %v3248_v38 = vpop.eup %3247 }
0x1665   : > { %v2553_v4 = vmul.f32 %v3248_v38, %v2551_v51 }
0x1667   : > { %2555 = vst.msk [vmem:[%s431_s1 + $0x8] sm:$0xff] %vm639_vm3, %v2553_v4 }
0x1668   : > { %3322 = shalt.err (!%p3319_p1)
}
0x1669   : > { %s3323_s17 = scalar_lea.hbm %s4058_s26, 256  ;;  %s3327_s11 = scalar_lea.hbm %s4119_s9, 512 }
0x166a   : > { %p3324_p6 = scmp.ne.s32.totalorder %s4058_s26, %s3323_s17  ;;  %p3328_p4 = scmp.lt.u32.totalorder %s4058_s26, %s4119_s9 }
0x166b   : > { %p3329_p8 = scmp.lt.u32.totalorder %s3327_s11, %s3323_s17  ;;  %p3331_p3 = scmp.lt.u32.totalorder %s3323_s17, %s4058_s26 }
0x166c   : > { %p3325_p2 = pnand %p3324_p6, %p4146_p12 }
0x166d   : > { %p3330_p0 = por %p3329_p8, %p3328_p4 }
0x166e   : > { %p3326_p5 = pneg %p3325_p2 }
0x166f   : > { %p3332_p13 = por %p3331_p3, %p3330_p0 }
0x1671   : > { %p3333_p7 = pnand %p3332_p13, %p3326_p5 }
0x1673   : > { %3336 = shalt.err (!%p3333_p7)
}
0x1674   : > { %s3404_s23 = smov 128   ;;  %s3405_s27 = smov 8  }
0x1675   : > { %3137 = dma.vmem_to_hbm [thread:$0]  (%p4146_p12), %s4060_s28, 256, %s4058_s26, %s2557_s16, %s3404_s23, %s3404_s23, %s3405_s27  }
0x1676 PF: > { %s4147_s18 = sld [smem:[#allocation14_spill]]  ;;  %s2586_s24 = sand.u32 1, %s3375_s30  }
0x1677   : > { %p4149_p9 = scmp.ge.s32.totalorder %s3395_s14, 2  ;;  %s2587_s12 = scalar_lea.sflag [#allocation4], %s2586_s24 }
0x167c   : > { %p4148_p10 = scmp.ne.s32.totalorder %s4147_s18, 0 }
0x167e   : > { %p3147_p11 = pnand %p4149_p9, %p4148_p10 }
0x1680   : > { %3370 = dma.done.wait (!%p3147_p11), %s2587_s12, 256  }
0x1681   : > { %3372 = vsyncadd (!%p3147_p11), %s2587_s12, 4294967040  ;;  %s28_s14 = sadd.s32 1, %s3395_s14   ;;  %s4150_s25 = sld [smem:[#allocation11_spill]] }
0x1682   : > { %p25_p1 = scmp.ge.s32.totalorder %s28_s14, 4   ;;  %s4151_s11 = sld [smem:[#allocation13_spill]] }
0x1683   : > { %s4152_s22 = sld [smem:[#allocation12_spill]]  ;;  %s4153_s30 = smov %s3379_s10 }
0x1684   : > { %s4155_s12 = smov %s3391_s13  ;;  %27 = sbr.rel (!%p25_p1) target bundleno = 10 (0xa), region = 131 }
0x1687   : > { %s4154_s10 = smov %s4150_s25 }
0x1689   : > { %s4156_s13 = smov %s4152_s22 }
0x168b   :  { %2592 = vsyncpa [#allocation3], 1 }
0x168c   :  { %2594 = vsyncpa [#allocation3 + $0x1], 1 }
0x168d   :  { %2595 = vsyncpa [#allocation6], 1 }
0x168e   :  { %2597 = vsyncpa [#allocation6 + $0x1], 1 }
0x168f   :  { %2598 = vsyncpa [#allocation4], 1 }
0x1690   :  { %2600 = vsyncpa [#allocation4 + $0x1], 1 }

</bundles_post_ra>
